<compile_context>
chip_gen: v6e
topology: v6e:2x2x1
jax: 0.10.0
libtpu: 0.0.40
codegen_flags: <defaults>
</compile_context>

<pallas_src>
import functools

import jax
import jax.numpy as jnp
from jax.experimental import pallas as pl
from jax.experimental.pallas import tpu as pltpu

INPUT_SIZE = 784
HIDDEN_SIZE = 1000
NUM_CLASSES = 10

# Lane-aligned padded dims (multiples of 128).
HIDDEN_PAD = 1024
OUT_PAD = 128


def _round_up(x, m):
    return (x + m - 1) // m * m


def mlp_kernel(x_ref, w1_ref, b1_ref, w2_ref, b2_ref, out_ref):
    # fc1: (TM, 784)bf16 @ (784, 1024)bf16 -> f32 accumulation on the MXU.
    h = jnp.dot(x_ref[...], w1_ref[...], preferred_element_type=jnp.float32)
    # Bias add + ReLU in f32 on the VPU.
    h = jnp.maximum(h + b1_ref[...], 0.0)
    # fc2: (TM, 1024)bf16 @ (1024, 128)bf16 -> f32 accumulation on the MXU.
    o = jnp.dot(h.astype(jnp.bfloat16), w2_ref[...],
                preferred_element_type=jnp.float32)
    # Lane-dense (128-wide) f32 store.
    out_ref[...] = (o + b2_ref[...]).astype(out_ref.dtype)


@functools.partial(jax.jit, static_argnames=("tm",))
def net_forward(x, w1, b1, w2, b2, *, tm=256):
    """out = relu(x @ w1 + b1) @ w2 + b2, weights stored (in, out)."""
    B = x.shape[0]
    # Batch tile: whole (sublane-padded) batch when tiny, else 256-row tiles.
    TM = min(tm, _round_up(B, 8))
    B_pad = _round_up(B, TM)

    # Zero-pad to aligned shapes; bf16 for matmul operands, f32 for biases.
    x_p = jnp.zeros((B_pad, INPUT_SIZE), jnp.bfloat16).at[:B].set(
        x.astype(jnp.bfloat16))
    w1_p = jnp.zeros((INPUT_SIZE, HIDDEN_PAD), jnp.bfloat16).at[
        :, :HIDDEN_SIZE].set(w1.astype(jnp.bfloat16))
    b1_p = jnp.zeros((1, HIDDEN_PAD), jnp.float32).at[:, :HIDDEN_SIZE].set(b1)
    w2_p = jnp.zeros((HIDDEN_PAD, OUT_PAD), jnp.bfloat16).at[
        :HIDDEN_SIZE, :NUM_CLASSES].set(w2.astype(jnp.bfloat16))
    b2_p = jnp.zeros((1, OUT_PAD), jnp.float32).at[:, :NUM_CLASSES].set(b2)

    out_pad = pl.pallas_call(
        mlp_kernel,
        out_shape=jax.ShapeDtypeStruct((B_pad, OUT_PAD), jnp.float32),
        grid=(B_pad // TM,),
        in_specs=[
            pl.BlockSpec((TM, INPUT_SIZE), lambda i: (i, 0)),
            # Constant index_map -> weights/biases fetched once, stay resident
            # in VMEM and are reused across all batch tiles.
            pl.BlockSpec((INPUT_SIZE, HIDDEN_PAD), lambda i: (0, 0)),
            pl.BlockSpec((1, HIDDEN_PAD), lambda i: (0, 0)),
            pl.BlockSpec((HIDDEN_PAD, OUT_PAD), lambda i: (0, 0)),
            pl.BlockSpec((1, OUT_PAD), lambda i: (0, 0)),
        ],
        out_specs=pl.BlockSpec((TM, OUT_PAD), lambda i: (i, 0)),
        compiler_params=pltpu.CompilerParams(
            # Batch axis is embarrassingly parallel (megacore / v7x 2-TC sharding).
            dimension_semantics=("parallel",),
        ),
    )(x_p, w1_p, b1_p, w2_p, b2_p)

    # Strip batch / class padding outside the kernel.
    return out_pad[:B, :NUM_CLASSES]
    # TODO(synk): for repeated small-batch inference, pin weights in VMEM across
    # calls (cross-pallas_call prefetch) instead of re-DMAing them per call.


def init_params(key):
    # Deterministic init mimicking PyTorch nn.Linear default:
    # U(-1/sqrt(fan_in), 1/sqrt(fan_in)) for both weights and biases.
    k1, k2, k3, k4 = jax.random.split(key, 4)
    bound1 = 1.0 / jnp.sqrt(INPUT_SIZE)
    bound2 = 1.0 / jnp.sqrt(HIDDEN_SIZE)
    w1 = jax.random.uniform(k1, (INPUT_SIZE, HIDDEN_SIZE), jnp.float32,
                            minval=-bound1, maxval=bound1)
    b1 = jax.random.uniform(k2, (1, HIDDEN_SIZE), jnp.float32,
                            minval=-bound1, maxval=bound1)
    w2 = jax.random.uniform(k3, (HIDDEN_SIZE, NUM_CLASSES), jnp.float32,
                            minval=-bound2, maxval=bound2)
    b2 = jax.random.uniform(k4, (1, NUM_CLASSES), jnp.float32,
                            minval=-bound2, maxval=bound2)
    return w1, b1, w2, b2


def _reference_bf16(x, w1, b1, w2, b2):
    # Emulate the kernel's bf16 matmul operands (f32 accumulation) in plain JAX.
    xb = x.astype(jnp.bfloat16).astype(jnp.float32)
    w1b = w1.astype(jnp.bfloat16).astype(jnp.float32)
    w2b = w2.astype(jnp.bfloat16).astype(jnp.float32)
    h = jnp.maximum(xb @ w1b + b1, 0.0)
    return h.astype(jnp.bfloat16).astype(jnp.float32) @ w2b + b2


if __name__ == "__main__":
    key = jax.random.PRNGKey(0)
    k_in, k_param = jax.random.split(key)
    w1, b1, w2, b2 = init_params(k_param)

    # Small batch (grid of 1 tile).
    batch = 8
    x = jax.random.normal(k_in, (batch, INPUT_SIZE), jnp.float32)
    out = jax.block_until_ready(net_forward(x, w1, b1, w2, b2))
    assert out.shape == (batch, NUM_CLASSES)

    ref = _reference_bf16(x, w1, b1, w2, b2)
    assert jnp.allclose(out, ref, atol=1e-2, rtol=1e-2), \
        float(jnp.max(jnp.abs(out - ref)))
    ref_f32 = jnp.maximum(x @ w1 + b1, 0.0) @ w2 + b2
    assert jnp.allclose(out, ref_f32, atol=5e-2, rtol=5e-2), \
        float(jnp.max(jnp.abs(out - ref_f32)))

    # Non-multiple batch exercising batch tiling + padding (TM=256, 2 tiles).
    batch2 = 300
    x2 = jax.random.normal(jax.random.PRNGKey(1), (batch2, INPUT_SIZE), jnp.float32)
    out2 = jax.block_until_ready(net_forward(x2, w1, b1, w2, b2))
    ref2 = _reference_bf16(x2, w1, b1, w2, b2)
    assert out2.shape == (batch2, NUM_CLASSES)
    assert jnp.allclose(out2, ref2, atol=1e-2, rtol=1e-2), \
        float(jnp.max(jnp.abs(out2 - ref2)))

    print("KERNEL_OK")
</pallas_src>

<mosaic_0001>
module attributes {stable_mosaic.version = 11 : i64} {
  func.func @mlp_kernel(%arg0: i32, %arg1: memref<8x784xbf16, #tpu.memory_space<vmem>>, %arg2: memref<784x1024xbf16, #tpu.memory_space<vmem>>, %arg3: memref<1x1024xf32, #tpu.memory_space<vmem>>, %arg4: memref<1024x128xbf16, #tpu.memory_space<vmem>>, %arg5: memref<1x128xf32, #tpu.memory_space<vmem>>, %arg6: memref<8x128xf32, #tpu.memory_space<vmem>>) attributes {dimension_semantics = [#tpu.dimension_semantics<parallel>], iteration_bounds = array<i64: 1>, scalar_prefetch = 0 : i64, scratch_operands = 0 : i64, tpu.core_type = #tpu.core_type<tc>, window_params = [{transform_indices = @transform_0, window_bounds = array<i64: 8, 784>}, {pipeline_mode = #tpu.pipeline_mode<synchronous>, transform_indices = @transform_1, window_bounds = array<i64: 784, 1024>}, {pipeline_mode = #tpu.pipeline_mode<synchronous>, transform_indices = @transform_2, window_bounds = array<i64: 1, 1024>}, {pipeline_mode = #tpu.pipeline_mode<synchronous>, transform_indices = @transform_3, window_bounds = array<i64: 1024, 128>}, {pipeline_mode = #tpu.pipeline_mode<synchronous>, transform_indices = @transform_4, window_bounds = array<i64: 1, 128>}, {transform_indices = @transform_5, window_bounds = array<i64: 8, 128>}]} {
    %c0 = arith.constant 0 : index
    %c0_0 = arith.constant 0 : index
    %0 = vector.load %arg1[%c0, %c0_0] : memref<8x784xbf16, #tpu.memory_space<vmem>>, vector<8x784xbf16>
    %c0_1 = arith.constant 0 : index
    %c0_2 = arith.constant 0 : index
    %1 = vector.load %arg2[%c0_1, %c0_2] : memref<784x1024xbf16, #tpu.memory_space<vmem>>, vector<784x1024xbf16>
    %cst = arith.constant dense<0.000000e+00> : vector<8x1024xf32>
    %2 = tpu.matmul %0, %1, %cst {dimension_numbers = #tpu.dot_dimension_numbers<[1], [0], [0], [1], [0, 0, 1, 1], [], []>} : vector<8x784xbf16>, vector<784x1024xbf16>, vector<8x1024xf32> -> vector<8x1024xf32>
    %c0_3 = arith.constant 0 : index
    %c0_4 = arith.constant 0 : index
    %3 = vector.load %arg3[%c0_3, %c0_4] : memref<1x1024xf32, #tpu.memory_space<vmem>>, vector<1x1024xf32>
    %4 = vector.broadcast %3 : vector<1x1024xf32> to vector<8x1024xf32>
    %5 = arith.addf %2, %4 : vector<8x1024xf32>
    %cst_5 = arith.constant 0.000000e+00 : f32
    %6 = vector.broadcast %cst_5 : f32 to vector<8x1024xf32>
    %7 = arith.maximumf %5, %6 : vector<8x1024xf32>
    %8 = arith.truncf %7 : vector<8x1024xf32> to vector<8x1024xbf16>
    %c0_6 = arith.constant 0 : index
    %c0_7 = arith.constant 0 : index
    %9 = vector.load %arg4[%c0_6, %c0_7] : memref<1024x128xbf16, #tpu.memory_space<vmem>>, vector<1024x128xbf16>
    %cst_8 = arith.constant dense<0.000000e+00> : vector<8x128xf32>
    %10 = tpu.matmul %8, %9, %cst_8 {dimension_numbers = #tpu.dot_dimension_numbers<[1], [0], [0], [1], [0, 0, 1, 1], [], []>} : vector<8x1024xbf16>, vector<1024x128xbf16>, vector<8x128xf32> -> vector<8x128xf32>
    %c0_9 = arith.constant 0 : index
    %c0_10 = arith.constant 0 : index
    %11 = vector.load %arg5[%c0_9, %c0_10] : memref<1x128xf32, #tpu.memory_space<vmem>>, vector<1x128xf32>
    %12 = vector.broadcast %11 : vector<1x128xf32> to vector<8x128xf32>
    %13 = arith.addf %10, %12 : vector<8x128xf32>
    %c0_11 = arith.constant 0 : index
    %c0_12 = arith.constant 0 : index
    %14 = vector.load %arg6[%c0_11, %c0_12] : memref<8x128xf32, #tpu.memory_space<vmem>>, vector<8x128xf32>
    tpu.vector_store %arg6[%c0_11, %c0_12], %13 {strides = array<i32>} : memref<8x128xf32, #tpu.memory_space<vmem>>, vector<8x128xf32>,
    return
  }
  func.func @transform_0(%arg0: i32) -> (i32, i32) {
    %c0_i32 = arith.constant 0 : i32
    %c0_i32_0 = arith.constant 0 : i32
    return %arg0, %c0_i32 : i32, i32
  }
  func.func @transform_1(%arg0: i32) -> (i32, i32) {
    %c0_i32 = arith.constant 0 : i32
    %c0_i32_0 = arith.constant 0 : i32
    %c0_i32_1 = arith.constant 0 : i32
    return %c0_i32, %c0_i32_0 : i32, i32
  }
  func.func @transform_2(%arg0: i32) -> (i32, i32) {
    %c0_i32 = arith.constant 0 : i32
    %c0_i32_0 = arith.constant 0 : i32
    %c0_i32_1 = arith.constant 0 : i32
    return %c0_i32, %c0_i32_0 : i32, i32
  }
  func.func @transform_3(%arg0: i32) -> (i32, i32) {
    %c0_i32 = arith.constant 0 : i32
    %c0_i32_0 = arith.constant 0 : i32
    %c0_i32_1 = arith.constant 0 : i32
    return %c0_i32, %c0_i32_0 : i32, i32
  }
  func.func @transform_4(%arg0: i32) -> (i32, i32) {
    %c0_i32 = arith.constant 0 : i32
    %c0_i32_0 = arith.constant 0 : i32
    %c0_i32_1 = arith.constant 0 : i32
    return %c0_i32, %c0_i32_0 : i32, i32
  }
  func.func @transform_5(%arg0: i32) -> (i32, i32) {
    %c0_i32 = arith.constant 0 : i32
    %c0_i32_0 = arith.constant 0 : i32
    return %arg0, %c0_i32 : i32, i32
  }
}

</mosaic_0001>

<bundles_post_ra>
// kernel: net_forward.1
= control target key start
LH: loop header
LB: loop body
LE: loop exit
PB: predicated region body
PF: predicated region fallthrough
CT: control target
= control target key end

     0   :  { %vm2444_vm0 = vcmask 130048   ;;  %s6019_s0 = inlined_call_operand.vmem [shape: bf16[8,784], index: 0, kind: input, shape index: {}]   ;;  %s6020_s1 = inlined_call_operand.vmem [shape: bf16[784,1024], index: 1, kind: input, shape index: {}]   ;;  %s6021_s2 = inlined_call_operand.vmem [shape: f32[1,1024], index: 2, kind: input, shape index: {}]   ;;  %s6022_s3 = inlined_call_operand.vmem [shape: bf16[1024,128], index: 3, kind: input, shape index: {}]   ;;  %s6023_s4 = inlined_call_operand.vmem [shape: f32[1,128], index: 4, kind: input, shape index: {}]   ;;  %s6024_s5 = inlined_call_operand.hbm [shape: f32[8,128], index: 5, kind: output, shape index: {}]  }
   0x1   :  { %v82_v0 = vld [vmem:[%s6020_s1 + $0x1c0] sm:$0xff]  ;;  %v4592_v54 = vld [vmem:[%s6019_s0 + $0x8] sm:$0xff] }
   0x2   :  { %v86_v1 = vld [vmem:[%s6020_s1 + $0x1e0] sm:$0xff]  ;;  %v4606_v59 = vcombine.high %v4592_v54, %v4592_v54 }
   0x3   :  { %v210_v2 = vld [vmem:[%s6020_s1 + $0x5c0] sm:$0xff]  ;;  %v3878_v3 = vcombine.high %v82_v0, %v86_v1  ;;  %v3877_v5 = vcombine.low %v82_v0, %v86_v1 }
   0x4   :  { %v214_v4 = vld [vmem:[%s6020_s1 + $0x5e0] sm:$0xff]  ;;  %2521 = vmatprep.mubr.bf16.mxu1 %v4606_v59 }
   0x5   :  { %v74_v6 = vld [vmem:[%s6020_s1 + $0x180] sm:$0xff]  ;;  %v4006_v8 = vcombine.high %v210_v2, %v214_v4  ;;  %v4005_v9 = vcombine.low %v210_v2, %v214_v4  ;;  %2448 = vmatprep.subr.bf16.mxu0 %v3878_v3 }
   0x6   :  { %v78_v7 = vld [vmem:[%s6020_s1 + $0x1a0] sm:$0xff]  ;;  %2449 = vmatpush1.bf16.msra.mxu0 %v3877_v5 }
   0x7   :  { %v3870_v10 = vcombine.high %v74_v6, %v78_v7  ;;  %v202_v11 = vld [vmem:[%s6020_s1 + $0x580] sm:$0xff]  ;;  %2489 = vmatprep.subr.bf16.mxu1 %v4006_v8  ;;  %v3869_v18 = vcombine.low %v74_v6, %v78_v7 }
   0x8   :  { %v206_v12 = vld [vmem:[%s6020_s1 + $0x5a0] sm:$0xff]  ;;  %2490 = vmatpush1.bf16.msra.mxu1 %v4005_v9 }
   0x9   :  { %v66_v13 = vld [vmem:[%s6020_s1 + $0x140] sm:$0xff]  ;;  %v3998_v14 = vcombine.high %v202_v11, %v206_v12  ;;  %2450 = vmatprep.subr.bf16.mxu0 %v3870_v10  ;;  %v3997_v19 = vcombine.low %v202_v11, %v206_v12 }
   0xa   :  { %v70_v15 = vld [vmem:[%s6020_s1 + $0x160] sm:$0xff]  ;;  %2451 = vmatpush1.bf16.msra.mxu0 %v3869_v18 }
   0xb   :  { %v194_v16 = vld [vmem:[%s6020_s1 + $0x540] sm:$0xff]  ;;  %v3862_v20 = vcombine.high %v66_v13, %v70_v15  ;;  %2491 = vmatprep.subr.bf16.mxu1 %v3998_v14  ;;  %v3861_v26 = vcombine.low %v66_v13, %v70_v15 }
   0xc   :  { %v198_v17 = vld [vmem:[%s6020_s1 + $0x560] sm:$0xff]  ;;  %2492 = vmatpush1.bf16.msra.mxu1 %v3997_v19 }
   0xd   :  { %v3990_v21 = vcombine.high %v194_v16, %v198_v17  ;;  %v58_v22 = vld [vmem:[%s6020_s1 + $0x100] sm:$0xff]  ;;  %2452 = vmatprep.subr.bf16.mxu0 %v3862_v20  ;;  %v3989_v27 = vcombine.low %v194_v16, %v198_v17 }
   0xe   :  { %v62_v23 = vld [vmem:[%s6020_s1 + $0x120] sm:$0xff]  ;;  %2453 = vmatpush1.bf16.msra.mxu0 %v3861_v26 }
   0xf   :  { %v186_v24 = vld [vmem:[%s6020_s1 + $0x500] sm:$0xff]  ;;  %v3854_v28 = vcombine.high %v58_v22, %v62_v23  ;;  %2493 = vmatprep.subr.bf16.mxu1 %v3990_v21  ;;  %v3853_v34 = vcombine.low %v58_v22, %v62_v23 }
  0x10   :  { %v190_v25 = vld [vmem:[%s6020_s1 + $0x520] sm:$0xff]  ;;  %2494 = vmatpush1.bf16.msra.mxu1 %v3989_v27 }
  0x11   :  { %v3982_v29 = vcombine.high %v186_v24, %v190_v25  ;;  %v50_v30 = vld [vmem:[%s6020_s1 + $0xc0] sm:$0xff]  ;;  %2454 = vmatprep.subr.bf16.mxu0 %v3854_v28  ;;  %v3981_v35 = vcombine.low %v186_v24, %v190_v25 }
  0x12   :  { %v54_v31 = vld [vmem:[%s6020_s1 + $0xe0] sm:$0xff]  ;;  %2455 = vmatpush1.bf16.msra.mxu0 %v3853_v34 }
  0x13   :  { %v178_v32 = vld [vmem:[%s6020_s1 + $0x4c0] sm:$0xff]  ;;  %v3846_v36 = vcombine.high %v50_v30, %v54_v31  ;;  %2495 = vmatprep.subr.bf16.mxu1 %v3982_v29  ;;  %v3845_v42 = vcombine.low %v50_v30, %v54_v31 }
  0x14   :  { %v182_v33 = vld [vmem:[%s6020_s1 + $0x4e0] sm:$0xff]  ;;  %2496 = vmatpush1.bf16.msra.mxu1 %v3981_v35 }
  0x15   :  { %v3974_v37 = vcombine.high %v178_v32, %v182_v33  ;;  %v42_v38 = vld [vmem:[%s6020_s1 + $0x80] sm:$0xff]  ;;  %2456 = vmatprep.subr.bf16.mxu0 %v3846_v36  ;;  %v3973_v43 = vcombine.low %v178_v32, %v182_v33 }
  0x16   :  { %v46_v39 = vld [vmem:[%s6020_s1 + $0xa0] sm:$0xff]  ;;  %2457 = vmatpush1.bf16.msra.mxu0 %v3845_v42 }
  0x17   :  { %v170_v40 = vld [vmem:[%s6020_s1 + $0x480] sm:$0xff]  ;;  %v3838_v44 = vcombine.high %v42_v38, %v46_v39  ;;  %2497 = vmatprep.subr.bf16.mxu1 %v3974_v37  ;;  %v3837_v50 = vcombine.low %v42_v38, %v46_v39 }
  0x18   :  { %v174_v41 = vld [vmem:[%s6020_s1 + $0x4a0] sm:$0xff]  ;;  %2498 = vmatpush1.bf16.msra.mxu1 %v3973_v43 }
  0x19   :  { %v3966_v45 = vcombine.high %v170_v40, %v174_v41  ;;  %v34_v46 = vld [vmem:[%s6020_s1 + $0x40] sm:$0xff]  ;;  %2458 = vmatprep.subr.bf16.mxu0 %v3838_v44  ;;  %v3965_v51 = vcombine.low %v170_v40, %v174_v41 }
  0x1a   :  { %v38_v47 = vld [vmem:[%s6020_s1 + $0x60] sm:$0xff]  ;;  %2459 = vmatpush1.bf16.msra.mxu0 %v3837_v50 }
  0x1b   :  { %v162_v48 = vld [vmem:[%s6020_s1 + $0x440] sm:$0xff]  ;;  %v3830_v52 = vcombine.high %v34_v46, %v38_v47  ;;  %2499 = vmatprep.subr.bf16.mxu1 %v3966_v45  ;;  %v3829_v62 = vcombine.low %v34_v46, %v38_v47 }
  0x1c   :  { %v166_v49 = vld [vmem:[%s6020_s1 + $0x460] sm:$0xff]  ;;  %2500 = vmatpush1.bf16.msra.mxu1 %v3965_v51 }
  0x1d   :  { %v4587_v53 = vld [vmem:[%s6019_s0] sm:$0xff]  ;;  %v3958_v55 = vcombine.high %v162_v48, %v166_v49  ;;  %2460 = vmatprep.subr.bf16.mxu0 %v3830_v52  ;;  %v3957_v63 = vcombine.low %v162_v48, %v166_v49 }
  0x1e   :  { %v26_v56 = vld [vmem:[%s6020_s1] sm:$0xff]  ;;  %v4602_v58 = vcombine.high %v4587_v53, %v4587_v53  ;;  %2461 = vmatpush1.bf16.msra.mxu0 %v3829_v62 }
  0x1f   :  { %v30_v57 = vld [vmem:[%s6020_s1 + $0x20] sm:$0xff]  ;;  %2501 = vmatprep.subr.bf16.mxu1 %v3958_v55 }
  0x20   :  { %v154_v60 = vld [vmem:[%s6020_s1 + $0x400] sm:$0xff]  ;;  %2480 = vmatprep.mubr.bf16.mxu0 %v4602_v58  ;;  %v3822_v0 = vcombine.high %v26_v56, %v30_v57  ;;  %v3821_v6 = vcombine.low %v26_v56, %v30_v57  ;;  %2502 = vmatpush1.bf16.msra.mxu1 %v3957_v63 }
  0x21   :  { %v158_v61 = vld [vmem:[%s6020_s1 + $0x420] sm:$0xff] }
  0x22   :  { %v3950_v1 = vcombine.high %v154_v60, %v158_v61  ;;  %v146_v2 = vld [vmem:[%s6020_s1 + $0x3c0] sm:$0xff]  ;;  %2462 = vmatprep.subr.bf16.mxu0 %v3822_v0  ;;  %v3949_v7 = vcombine.low %v154_v60, %v158_v61 }
  0x23   :  { %v150_v3 = vld [vmem:[%s6020_s1 + $0x3e0] sm:$0xff]  ;;  %2463 = vmatpush1.bf16.msra.mxu0 %v3821_v6 }
  0x24   :  { %v274_v4 = vld [vmem:[%s6020_s1 + $0x7c0] sm:$0xff]  ;;  %v3942_v8 = vcombine.high %v146_v2, %v150_v3  ;;  %2503 = vmatprep.subr.bf16.mxu1 %v3950_v1  ;;  %v3941_v14 = vcombine.low %v146_v2, %v150_v3 }
  0x25   :  { %v278_v5 = vld [vmem:[%s6020_s1 + $0x7e0] sm:$0xff]  ;;  %2504 = vmatpush1.bf16.msra.mxu1 %v3949_v7 }
  0x26   :  { %v4070_v9 = vcombine.high %v274_v4, %v278_v5  ;;  %v138_v10 = vld [vmem:[%s6020_s1 + $0x380] sm:$0xff]  ;;  %2464 = vmatprep.subr.bf16.mxu0 %v3942_v8  ;;  %v4069_v15 = vcombine.low %v274_v4, %v278_v5 }
  0x27   :  { %v142_v11 = vld [vmem:[%s6020_s1 + $0x3a0] sm:$0xff]  ;;  %2465 = vmatpush2.bf16.msra.mxu0 %v3941_v14 }
  0x28   :  { %v266_v12 = vld [vmem:[%s6020_s1 + $0x780] sm:$0xff]  ;;  %v3934_v16 = vcombine.high %v138_v10, %v142_v11  ;;  %2505 = vmatprep.subr.bf16.mxu1 %v4070_v9  ;;  %v3933_v22 = vcombine.low %v138_v10, %v142_v11 }
  0x29   :  { %v270_v13 = vld [vmem:[%s6020_s1 + $0x7a0] sm:$0xff]  ;;  %2506 = vmatpush2.bf16.msra.mxu1 %v4069_v15 }
  0x2a   :  { %v4062_v17 = vcombine.high %v266_v12, %v270_v13  ;;  %v130_v18 = vld [vmem:[%s6020_s1 + $0x340] sm:$0xff]  ;;  %2466 = vmatprep.subr.bf16.mxu0 %v3934_v16  ;;  %v4061_v23 = vcombine.low %v266_v12, %v270_v13  ;;  %v4732_v16 = vcombine.low %v4587_v53, %v4587_v53 }
  0x2b   :  { %v134_v19 = vld [vmem:[%s6020_s1 + $0x360] sm:$0xff]  ;;  %2467 = vmatpush2.bf16.msra.mxu0 %v3933_v22 }
  0x2c   :  { %v258_v20 = vld [vmem:[%s6020_s1 + $0x740] sm:$0xff]  ;;  %v3926_v24 = vcombine.high %v130_v18, %v134_v19  ;;  %2507 = vmatprep.subr.bf16.mxu1 %v4062_v17  ;;  %v3925_v30 = vcombine.low %v130_v18, %v134_v19  ;;  %v83_v17 = vld [vmem:[%s6020_s1 + $0x1c8] sm:$0xff]  ;;  %v4742_v19 = vcombine.low %v4592_v54, %v4592_v54 }
  0x2d   :  { %v262_v21 = vld [vmem:[%s6020_s1 + $0x760] sm:$0xff]  ;;  %2508 = vmatpush2.bf16.msra.mxu1 %v4061_v23  ;;  %v87_v18 = vld [vmem:[%s6020_s1 + $0x1e8] sm:$0xff] }
  0x2e   :  { %v4054_v25 = vcombine.high %v258_v20, %v262_v21  ;;  %v122_v26 = vld [vmem:[%s6020_s1 + $0x300] sm:$0xff]  ;;  %2468 = vmatprep.subr.bf16.mxu0 %v3926_v24  ;;  %v4053_v31 = vcombine.low %v258_v20, %v262_v21  ;;  %v4747_v21 = vld [vmem:[%s6019_s0 + $0x10] sm:$0xff]  ;;  %v3880_v54 = vcombine.high %v83_v17, %v87_v18 }
  0x2f   :  { %v126_v27 = vld [vmem:[%s6020_s1 + $0x320] sm:$0xff]  ;;  %2469 = vmatpush2.bf16.msra.mxu0 %v3925_v30 }
  0x30   :  { %v250_v28 = vld [vmem:[%s6020_s1 + $0x700] sm:$0xff]  ;;  %v3918_v32 = vcombine.high %v122_v26, %v126_v27  ;;  %2509 = vmatprep.subr.bf16.mxu1 %v4054_v25  ;;  %v3917_v38 = vcombine.low %v122_v26, %v126_v27  ;;  %v4758_v25 = vcombine.high %v4747_v21, %v4747_v21 }
  0x31   :  { %v254_v29 = vld [vmem:[%s6020_s1 + $0x720] sm:$0xff]  ;;  %2510 = vmatpush2.bf16.msra.mxu1 %v4053_v31  ;;  %v4468_v31 = vmov 0  }
  0x32   :  { %v4046_v33 = vcombine.high %v250_v28, %v254_v29  ;;  %v114_v34 = vld [vmem:[%s6020_s1 + $0x2c0] sm:$0xff]  ;;  %2470 = vmatprep.subr.bf16.mxu0 %v3918_v32  ;;  %v4045_v39 = vcombine.low %v250_v28, %v254_v29  ;;  %v75_v28 = vld [vmem:[%s6020_s1 + $0x188] sm:$0xff]  ;;  %v4376_v32 = vld [vmem:[%s6019_s0 + $0x18] ss:$0 sps:$4 sm:$0xff]  }
  0x33   :  { %v118_v35 = vld [vmem:[%s6020_s1 + $0x2e0] sm:$0xff]  ;;  %2471 = vmatpush2.bf16.msra.mxu0 %v3917_v38  ;;  %v79_v29 = vld [vmem:[%s6020_s1 + $0x1a8] sm:$0xff] }
  0x34   :  { %v242_v36 = vld [vmem:[%s6020_s1 + $0x6c0] sm:$0xff]  ;;  %v3910_v40 = vcombine.high %v114_v34, %v118_v35  ;;  %2511 = vmatprep.subr.bf16.mxu1 %v4046_v33  ;;  %v3909_v46 = vcombine.low %v114_v34, %v118_v35  ;;  %v3879_v35 = vcombine.low %v83_v17, %v87_v18  ;;  %v71_v38 = vld [vmem:[%s6020_s1 + $0x168] sm:$0xff] }
  0x35   :  { %v246_v37 = vld [vmem:[%s6020_s1 + $0x6e0] sm:$0xff]  ;;  %2512 = vmatpush2.bf16.msra.mxu1 %v4045_v39  ;;  %v27_v18 = vld [vmem:[%s6020_s1 + $0x8] sm:$0xff] }
  0x36   :  { %v4038_v41 = vcombine.high %v242_v36, %v246_v37  ;;  %v106_v42 = vld [vmem:[%s6020_s1 + $0x280] sm:$0xff]  ;;  %2472 = vmatprep.subr.bf16.mxu0 %v3910_v40  ;;  %v4037_v47 = vcombine.low %v242_v36, %v246_v37  ;;  %v67_v37 = vld [vmem:[%s6020_s1 + $0x148] sm:$0xff]  ;;  %v3872_v40 = vcombine.high %v75_v28, %v79_v29 }
  0x37   :  { %v110_v43 = vld [vmem:[%s6020_s1 + $0x2a0] sm:$0xff]  ;;  %2473 = vmatpush2.bf16.msra.mxu0 %v3909_v46  ;;  %v63_v46 = vld [vmem:[%s6020_s1 + $0x128] sm:$0xff] }
  0x38   :  { %v234_v44 = vld [vmem:[%s6020_s1 + $0x680] sm:$0xff]  ;;  %v3902_v48 = vcombine.high %v106_v42, %v110_v43  ;;  %2513 = vmatprep.subr.bf16.mxu1 %v4038_v41  ;;  %v3901_v56 = vcombine.low %v106_v42, %v110_v43  ;;  %v3871_v43 = vcombine.low %v75_v28, %v79_v29  ;;  %v151_v28 = vld [vmem:[%s6020_s1 + $0x3e8] sm:$0xff] }
  0x39   :  { %v238_v45 = vld [vmem:[%s6020_s1 + $0x6a0] sm:$0xff]  ;;  %2514 = vmatpush2.bf16.msra.mxu1 %v4037_v47 }
  0x3a   :  { %v4030_v49 = vcombine.high %v234_v44, %v238_v45  ;;  %v98_v50 = vld [vmem:[%s6020_s1 + $0x240] sm:$0xff]  ;;  %2474 = vmatprep.subr.bf16.mxu0 %v3902_v48  ;;  %v4029_v57 = vcombine.low %v234_v44, %v238_v45  ;;  %v59_v45 = vld [vmem:[%s6020_s1 + $0x108] sm:$0xff]  ;;  %v3864_v48 = vcombine.high %v67_v37, %v71_v38 }
  0x3b   :  { %v102_v51 = vld [vmem:[%s6020_s1 + $0x260] sm:$0xff]  ;;  %2475 = vmatpush2.bf16.msra.mxu0 %v3901_v56  ;;  %v55_v56 = vld [vmem:[%s6020_s1 + $0xe8] sm:$0xff] }
  0x3c   :  { %v226_v52 = vld [vmem:[%s6020_s1 + $0x640] sm:$0xff]  ;;  %v3894_v60 = vcombine.high %v98_v50, %v102_v51  ;;  %2515 = vmatprep.subr.bf16.mxu1 %v4030_v49  ;;  %v3893_v2 = vcombine.low %v98_v50, %v102_v51  ;;  %v3863_v51 = vcombine.low %v67_v37, %v71_v38  ;;  %v143_v37 = vld [vmem:[%s6020_s1 + $0x3a8] sm:$0xff] }
  0x3d   :  { %v230_v55 = vld [vmem:[%s6020_s1 + $0x660] sm:$0xff]  ;;  %2516 = vmatpush2.bf16.msra.mxu1 %v4029_v57 }
  0x3e   :  { %v4022_v61 = vcombine.high %v226_v52, %v230_v55  ;;  %v90_v62 = vld [vmem:[%s6020_s1 + $0x200] sm:$0xff]  ;;  %2476 = vmatprep.subr.bf16.mxu0 %v3894_v60  ;;  %v4021_v3 = vcombine.low %v226_v52, %v230_v55  ;;  %v51_v55 = vld [vmem:[%s6020_s1 + $0xc8] sm:$0xff]  ;;  %v3856_v60 = vcombine.high %v59_v45, %v63_v46 }
  0x3f   :  { %v94_v63 = vld [vmem:[%s6020_s1 + $0x220] sm:$0xff]  ;;  %2477 = vmatpush2.bf16.msra.mxu0 %v3893_v2  ;;  %v47_v2 = vld [vmem:[%s6020_s1 + $0xa8] sm:$0xff] }
  0x40   :  { %v218_v0 = vld [vmem:[%s6020_s1 + $0x600] sm:$0xff]  ;;  %v3886_v4 = vcombine.high %v90_v62, %v94_v63  ;;  %2517 = vmatprep.subr.bf16.mxu1 %v4022_v61  ;;  %v3885_v10 = vcombine.low %v90_v62, %v94_v63  ;;  %v3855_v63 = vcombine.low %v59_v45, %v63_v46  ;;  %v135_v45 = vld [vmem:[%s6020_s1 + $0x368] sm:$0xff] }
  0x41   :  { %v222_v1 = vld [vmem:[%s6020_s1 + $0x620] sm:$0xff]  ;;  %2518 = vmatpush2.bf16.msra.mxu1 %v4021_v3 }
  0x42   :  { %v4014_v5 = vcombine.high %v218_v0, %v222_v1  ;;  %v338_v6 = vld [vmem:[%s6020_s1 + $0x9c0] sm:$0xff]  ;;  %2478 = vmatprep.subr.bf16.mxu0 %v3886_v4  ;;  %v4013_v11 = vcombine.low %v218_v0, %v222_v1  ;;  %v43_v1 = vld [vmem:[%s6020_s1 + $0x88] sm:$0xff]  ;;  %v3848_v4 = vcombine.high %v51_v55, %v55_v56 }
  0x43   :  { %v342_v7 = vld [vmem:[%s6020_s1 + $0x9e0] sm:$0xff]  ;;  %2479 = vmatpush2.bf16.msra.mxu0 %v3885_v10  ;;  %v39_v10 = vld [vmem:[%s6020_s1 + $0x68] sm:$0xff] }
  0x44   :  { %v410_v8 = vld [vmem:[%s6020_s1 + $0xc00] sm:$0xff]  ;;  %v4134_v12 = vcombine.high %v338_v6, %v342_v7  ;;  %2519 = vmatprep.subr.bf16.mxu1 %v4014_v5  ;;  %v4133_v20 = vcombine.low %v338_v6, %v342_v7  ;;  %v3847_v7 = vcombine.low %v51_v55, %v55_v56  ;;  %v127_v55 = vld [vmem:[%s6020_s1 + $0x328] sm:$0xff] }
  0x45   :  { %v414_v9 = vld [vmem:[%s6020_s1 + $0xc20] sm:$0xff]  ;;  %2520 = vmatpush2.bf16.msra.mxu1 %v4013_v11 }
  0x46   :  { %v4206_v13 = vcombine.high %v410_v8, %v414_v9  ;;  %v330_v14 = vld [vmem:[%s6020_s1 + $0x980] sm:$0xff]  ;;  %2530 = vmatprep.subr.bf16.mxu0 %v4134_v12  ;;  %v4205_v53 = vcombine.low %v410_v8, %v414_v9  ;;  %2481 = vmatmul.mubr.bf16.vlgmr.msra.gmra.mxu0 %v4732_v16  ;;  %v35_v9 = vld [vmem:[%s6020_s1 + $0x48] sm:$0xff]  ;;  %v3840_v12 = vcombine.high %v43_v1, %v47_v2 }
  0x47   :  { %v334_v15 = vld [vmem:[%s6020_s1 + $0x9a0] sm:$0xff]  ;;  %2531 = vmatpush1.bf16.msra.mxu0 %v4133_v20  ;;  %2562 = vmatprep.mubr.bf16.mxu0 %v4758_v25  ;;  %v31_v20 = vld [vmem:[%s6020_s1 + $0x28] sm:$0xff] }
  0x48   :  { %v4126_v22 = vcombine.high %v330_v14, %v334_v15  ;;  %v322_v23 = vld [vmem:[%s6020_s1 + $0x940] sm:$0xff]  ;;  %2585 = vmatprep.subr.bf16.mxu1 %v4206_v13  ;;  %2522 = vmatmul.mubr.bf16.vlgmr.msra.gmra.mxu1 %v4742_v19  ;;  %v4125_v26 = vcombine.low %v330_v14, %v334_v15  ;;  %v3839_v15 = vcombine.low %v43_v1, %v47_v2  ;;  %v119_v1 = vld [vmem:[%s6020_s1 + $0x2e8] sm:$0xff] }
  0x49   :  { %v326_v24 = vld [vmem:[%s6020_s1 + $0x960] sm:$0xff]  ;;  %2586 = vmatpush1.bf16.msra.mxu1 %v4205_v53  ;;  %2603 = vmatprep.mubr.bf16.mxu1 %v4468_v31 }
  0x4a   :  { %2532 = vmatprep.subr.bf16.mxu0 %v4126_v22  ;;  %v4118_v27 = vcombine.high %v322_v23, %v326_v24  ;;  %v314_v30 = vld [vmem:[%s6020_s1 + $0x900] sm:$0xff]  ;;  %2612 = vmatprep.subr.bf16.mxu1 %v3880_v54  ;;  %v4117_v34 = vcombine.low %v322_v23, %v326_v24  ;;  %v3832_v22 = vcombine.high %v35_v9, %v39_v10 }
  0x4b   :  { %v318_v33 = vld [vmem:[%s6020_s1 + $0x920] sm:$0xff]  ;;  %2533 = vmatpush1.bf16.msra.mxu0 %v4125_v26  ;;  %v3831_v54 = vcombine.low %v35_v9, %v39_v10  ;;  %v111_v9 = vld [vmem:[%s6020_s1 + $0x2a8] sm:$0xff] }
  0x4c   :  { %2534 = vmatprep.subr.bf16.mxu0 %v4118_v27  ;;  %v4110_v36 = vcombine.high %v314_v30, %v318_v33  ;;  %v306_v39 = vld [vmem:[%s6020_s1 + $0x8c0] sm:$0xff]  ;;  %v4109_v42 = vcombine.low %v314_v30, %v318_v33  ;;  %v147_v27 = vld [vmem:[%s6020_s1 + $0x3c8] sm:$0xff]  ;;  %v3824_v30 = vcombine.high %v27_v18, %v31_v20 }
  0x4d   :  { %v310_v41 = vld [vmem:[%s6020_s1 + $0x8e0] sm:$0xff] }
  0x4e   :  { %v4102_v44 = vcombine.high %v306_v39, %v310_v41  ;;  %v298_v47 = vld [vmem:[%s6020_s1 + $0x880] sm:$0xff]  ;;  %v4101_v50 = vcombine.low %v306_v39, %v310_v41  ;;  %v3944_v39 = vcombine.high %v147_v27, %v151_v28 }
  0x4f   :  { %2535 = vmatpush1.bf16.msra.mxu0 %v4117_v34  ;;  %v302_v49 = vld [vmem:[%s6020_s1 + $0x8a0] sm:$0xff]  ;;  %v3823_v34 = vcombine.low %v27_v18, %v31_v20  ;;  %v103_v18 = vld [vmem:[%s6020_s1 + $0x268] sm:$0xff] }
  0x50   :  { %4213 = vmatmul.mubr.msk.bf16.vlgmr.msra.gmra.mxu1 %vm2444_vm0, %v4376_v32  ;;  %2536 = vmatprep.subr.bf16.mxu0 %v4110_v36  ;;  %v4094_v52 = vcombine.high %v298_v47, %v302_v49  ;;  %v290_v57 = vld [vmem:[%s6020_s1 + $0x840] sm:$0xff]  ;;  %v4093_v62 = vcombine.low %v298_v47, %v302_v49  ;;  %v139_v36 = vld [vmem:[%s6020_s1 + $0x388] sm:$0xff] }
  0x51   :  { %2613 = vmatpush1.bf16.msra.mxu1 %v3879_v35  ;;  %2644 = vmatprep.mubr.bf16.mxu1 %v4602_v58  ;;  %v294_v61 = vld [vmem:[%s6020_s1 + $0x860] sm:$0xff]  ;;  %v3936_v47 = vcombine.high %v139_v36, %v143_v37  ;;  %v211_v20 = vld [vmem:[%s6020_s1 + $0x5c8] sm:$0xff] }
  0x52   :  { %2614 = vmatprep.subr.bf16.mxu1 %v3872_v40  ;;  %v4086_v0 = vcombine.high %v290_v57, %v294_v61  ;;  %v282_v3 = vld [vmem:[%s6020_s1 + $0x800] sm:$0xff]  ;;  %v4085_v6 = vcombine.low %v290_v57, %v294_v61 }
  0x53   :  { %2537 = vmatpush1.bf16.msra.mxu0 %v4109_v42  ;;  %v286_v5 = vld [vmem:[%s6020_s1 + $0x820] sm:$0xff]  ;;  %v3943_v42 = vcombine.low %v147_v27, %v151_v28  ;;  %v95_v27 = vld [vmem:[%s6020_s1 + $0x228] sm:$0xff] }
  0x54   :  { %2538 = vmatprep.subr.bf16.mxu0 %v4102_v44  ;;  %v4078_v8 = vcombine.high %v282_v3, %v286_v5  ;;  %v402_v11 = vld [vmem:[%s6020_s1 + $0xbc0] sm:$0xff]  ;;  %v4077_v14 = vcombine.low %v282_v3, %v286_v5  ;;  %v131_v44 = vld [vmem:[%s6020_s1 + $0x348] sm:$0xff] }
  0x55   :  { %2615 = vmatpush1.bf16.msra.mxu1 %v3871_v43  ;;  %v406_v13 = vld [vmem:[%s6020_s1 + $0xbe0] sm:$0xff]  ;;  %v3928_v57 = vcombine.high %v131_v44, %v135_v45  ;;  %v203_v28 = vld [vmem:[%s6020_s1 + $0x588] sm:$0xff] }
  0x56   :  { %2616 = vmatprep.subr.bf16.mxu1 %v3864_v48  ;;  %v4198_v17 = vcombine.high %v402_v11, %v406_v13  ;;  %v394_v53 = vld [vmem:[%s6020_s1 + $0xb80] sm:$0xff]  ;;  %v4197_v24 = vcombine.low %v402_v11, %v406_v13 }
  0x57   :  { %2539 = vmatpush1.bf16.msra.mxu0 %v4101_v50  ;;  %v398_v23 = vld [vmem:[%s6020_s1 + $0xba0] sm:$0xff]  ;;  %v3935_v50 = vcombine.low %v139_v36, %v143_v37 }
  0x58   :  { %2540 = vmatprep.subr.bf16.mxu0 %v4094_v52  ;;  %v4190_v26 = vcombine.high %v394_v53, %v398_v23  ;;  %v386_v29 = vld [vmem:[%s6020_s1 + $0xb40] sm:$0xff]  ;;  %v4189_v33 = vcombine.low %v394_v53, %v398_v23  ;;  %v123_v52 = vld [vmem:[%s6020_s1 + $0x308] sm:$0xff] }
  0x59   :  { %2617 = vmatpush1.bf16.msra.mxu1 %v3863_v51  ;;  %v390_v32 = vld [vmem:[%s6020_s1 + $0xb60] sm:$0xff]  ;;  %v3920_v3 = vcombine.high %v123_v52, %v127_v55 }
  0x5a   :  { %2618 = vmatprep.subr.bf16.mxu1 %v3856_v60  ;;  %v4182_v35 = vcombine.high %v386_v29, %v390_v32  ;;  %v378_v38 = vld [vmem:[%s6020_s1 + $0xb00] sm:$0xff]  ;;  %v4181_v41 = vcombine.low %v386_v29, %v390_v32  ;;  %v4950_v32 = vcombine.low %v4747_v21, %v4747_v21 }
  0x5b   :  { %2541 = vmatpush1.bf16.msra.mxu0 %v4093_v62  ;;  %v382_v40 = vld [vmem:[%s6020_s1 + $0xb20] sm:$0xff]  ;;  %v3927_v62 = vcombine.low %v131_v44, %v135_v45 }
  0x5c   :  { %2542 = vmatprep.subr.bf16.mxu0 %v4086_v0  ;;  %v4174_v43 = vcombine.high %v378_v38, %v382_v40  ;;  %v370_v46 = vld [vmem:[%s6020_s1 + $0xac0] sm:$0xff]  ;;  %v4173_v49 = vcombine.low %v378_v38, %v382_v40  ;;  %v115_v0 = vld [vmem:[%s6020_s1 + $0x2c8] sm:$0xff] }
  0x5d   :  { %2619 = vmatpush1.bf16.msra.mxu1 %v3855_v63  ;;  %v374_v48 = vld [vmem:[%s6020_s1 + $0xae0] sm:$0xff]  ;;  %v3912_v11 = vcombine.high %v115_v0, %v119_v1 }
  0x5e   :  { %2620 = vmatprep.subr.bf16.mxu1 %v3848_v4  ;;  %v4166_v51 = vcombine.high %v370_v46, %v374_v48  ;;  %v362_v56 = vld [vmem:[%s6020_s1 + $0xa80] sm:$0xff]  ;;  %v4165_v61 = vcombine.low %v370_v46, %v374_v48 }
  0x5f   :  { %2543 = vmatpush1.bf16.msra.mxu0 %v4085_v6  ;;  %v366_v60 = vld [vmem:[%s6020_s1 + $0xaa0] sm:$0xff]  ;;  %v3919_v6 = vcombine.low %v123_v52, %v127_v55 }
  0x60   :  { %2544 = vmatprep.subr.bf16.mxu0 %v4078_v8  ;;  %v4158_v63 = vcombine.high %v362_v56, %v366_v60  ;;  %v354_v2 = vld [vmem:[%s6020_s1 + $0xa40] sm:$0xff]  ;;  %v4157_v5 = vcombine.low %v362_v56, %v366_v60  ;;  %v107_v8 = vld [vmem:[%s6020_s1 + $0x288] sm:$0xff] }
  0x61   :  { %2621 = vmatpush1.bf16.msra.mxu1 %v3847_v7  ;;  %v358_v4 = vld [vmem:[%s6020_s1 + $0xa60] sm:$0xff]  ;;  %v3904_v53 = vcombine.high %v107_v8, %v111_v9 }
  0x62   :  { %2622 = vmatprep.subr.bf16.mxu1 %v3840_v12  ;;  %v4150_v7 = vcombine.high %v354_v2, %v358_v4  ;;  %v346_v10 = vld [vmem:[%s6020_s1 + $0xa00] sm:$0xff]  ;;  %v4149_v13 = vcombine.low %v354_v2, %v358_v4 }
  0x63   :  { %2545 = vmatpush1.bf16.msra.mxu0 %v4077_v14  ;;  %v350_v12 = vld [vmem:[%s6020_s1 + $0xa20] sm:$0xff]  ;;  %v3911_v14 = vcombine.low %v115_v0, %v119_v1 }
  0x64   :  { %2546 = vmatprep.subr.bf16.mxu0 %v4198_v17  ;;  %v99_v17 = vld [vmem:[%s6020_s1 + $0x248] sm:$0xff]  ;;  %v4141_v23 = vcombine.low %v346_v10, %v350_v12 }
  0x65   :  { %2623 = vmatpush1.bf16.msra.mxu1 %v3839_v15  ;;  %v4142_v15 = vcombine.high %v346_v10, %v350_v12  ;;  %v3896_v29 = vcombine.high %v99_v17, %v103_v18 }
  0x66   :  { %2624 = vmatprep.subr.bf16.mxu1 %v3832_v22  ;;  %v215_v22 = vld [vmem:[%s6020_s1 + $0x5e8] sm:$0xff] }
  0x67   :  { %2547 = vmatpush2.bf16.msra.mxu0 %v4197_v24  ;;  %v3903_v24 = vcombine.low %v107_v8, %v111_v9 }
  0x68   :  { %2548 = vmatprep.subr.bf16.mxu0 %v4190_v26  ;;  %v91_v26 = vld [vmem:[%s6020_s1 + $0x208] sm:$0xff] }
  0x69   :  { %2625 = vmatpush1.bf16.msra.mxu1 %v3831_v54  ;;  %v4008_v54 = vcombine.high %v211_v20, %v215_v22 }
  0x6a   :  { %2626 = vmatprep.subr.bf16.mxu1 %v3824_v30  ;;  %v207_v30 = vld [vmem:[%s6020_s1 + $0x5a8] sm:$0xff] }
  0x6b   :  { %2549 = vmatpush2.bf16.msra.mxu0 %v4189_v33  ;;  %v4007_v33 = vcombine.low %v211_v20, %v215_v22 }
  0x6c   :  { %2550 = vmatprep.subr.bf16.mxu0 %v4182_v35 }
  0x6d   :  { %2627 = vmatpush1.bf16.msra.mxu1 %v3823_v34 }
  0x6e   :  { %2628 = vmatprep.subr.bf16.mxu1 %v3944_v39 }
  0x6f   :  { %2551 = vmatpush2.bf16.msra.mxu0 %v4181_v41 }
  0x70   :  { %2552 = vmatprep.subr.bf16.mxu0 %v4174_v43 }
  0x71   :  { %2629 = vmatpush2.bf16.msra.mxu1 %v3943_v42 }
  0x72   :  { %2630 = vmatprep.subr.bf16.mxu1 %v3936_v47 }
  0x73   :  { %2553 = vmatpush2.bf16.msra.mxu0 %v4173_v49 }
  0x74   :  { %2554 = vmatprep.subr.bf16.mxu0 %v4166_v51 }
  0x75   :  { %2631 = vmatpush2.bf16.msra.mxu1 %v3935_v50 }
  0x76   :  { %2632 = vmatprep.subr.bf16.mxu1 %v3928_v57 }
  0x77   :  { %2555 = vmatpush2.bf16.msra.mxu0 %v4165_v61 }
  0x78   :  { %2556 = vmatprep.subr.bf16.mxu0 %v4158_v63 }
  0x79   :  { %2633 = vmatpush2.bf16.msra.mxu1 %v3927_v62 }
  0x7a   :  { %2634 = vmatprep.subr.bf16.mxu1 %v3920_v3 }
  0x7b   :  { %2557 = vmatpush2.bf16.msra.mxu0 %v4157_v5 }
  0x7c   :  { %2558 = vmatprep.subr.bf16.mxu0 %v4150_v7 }
  0x7d   :  { %2635 = vmatpush2.bf16.msra.mxu1 %v3919_v6 }
  0x7e   :  { %2636 = vmatprep.subr.bf16.mxu1 %v3912_v11 }
  0x7f   :  { %2559 = vmatpush2.bf16.msra.mxu0 %v4149_v13 }
  0x80   :  { %2560 = vmatprep.subr.bf16.mxu0 %v4142_v15 }
  0x81   :  { %2637 = vmatpush2.bf16.msra.mxu1 %v3911_v14 }
  0x82   :  { %2638 = vmatprep.subr.bf16.mxu1 %v3904_v53 }
  0x83   :  { %2561 = vmatpush2.bf16.msra.mxu0 %v4141_v23 }
  0x84   :  { %10 = vsyncpa [#allocation3], 0  ;;  %v3895_v34 = vcombine.low %v99_v17, %v103_v18  ;;  %2653 = vmatprep.subr.bf16.mxu0 %v4008_v54  ;;  %v4000_v35 = vcombine.high %v203_v28, %v207_v30  ;;  %v3888_v36 = vcombine.high %v91_v26, %v95_v27  ;;  %v195_v37 = vld [vmem:[%s6020_s1 + $0x548] sm:$0xff]  ;;  %v3999_v40 = vcombine.low %v203_v28, %v207_v30  ;;  %s4469_s8 = smov [#allocation2]  }
  0x85   :  { %2639 = vmatpush2.bf16.msra.mxu1 %v3903_v24  ;;  %v199_v38 = vld [vmem:[%s6020_s1 + $0x568] sm:$0xff]  ;;  %v3887_v41 = vcombine.low %v91_v26, %v95_v27 }
  0x86   :  { %2640 = vmatprep.subr.bf16.mxu1 %v3896_v29  ;;  %2563 = vmatmul.mubr.bf16.vlgmr.msra.gmra.mxu0 %v4950_v32  ;;  %v339_v21 = vld [vmem:[%s6020_s1 + $0x9c8] sm:$0xff]  ;;  %v3992_v42 = vcombine.high %v195_v37, %v199_v38  ;;  %v3991_v48 = vcombine.low %v195_v37, %v199_v38 }
  0x87   :  { %v343_v39 = vld [vmem:[%s6020_s1 + $0x9e8] sm:$0xff]  ;;  %2654 = vmatpush1.bf16.msra.mxu0 %v4007_v33  ;;  %2685 = vmatprep.mubr.bf16.mxu0 %v4606_v59 }
  0x88   :  { %2655 = vmatprep.subr.bf16.mxu0 %v4000_v35  ;;  %v4136_v43 = vcombine.high %v339_v21, %v343_v39  ;;  %v187_v44 = vld [vmem:[%s6020_s1 + $0x508] sm:$0xff]  ;;  %v4135_v49 = vcombine.low %v339_v21, %v343_v39 }
  0x89   :  { %2641 = vmatpush2.bf16.msra.mxu1 %v3895_v34  ;;  %v191_v45 = vld [vmem:[%s6020_s1 + $0x528] sm:$0xff] }
  0x8a   :  { %2642 = vmatprep.subr.bf16.mxu1 %v3888_v36  ;;  %v331_v46 = vld [vmem:[%s6020_s1 + $0x988] sm:$0xff]  ;;  %v3984_v50 = vcombine.high %v187_v44, %v191_v45  ;;  %v3983_v60 = vcombine.low %v187_v44, %v191_v45 }
  0x8b   :  { %v335_v47 = vld [vmem:[%s6020_s1 + $0x9a8] sm:$0xff]  ;;  %2656 = vmatpush1.bf16.msra.mxu0 %v3999_v40 }
  0x8c   :  { %2657 = vmatprep.subr.bf16.mxu0 %v3992_v42  ;;  %v4128_v51 = vcombine.high %v331_v46, %v335_v47  ;;  %v179_v52 = vld [vmem:[%s6020_s1 + $0x4c8] sm:$0xff]  ;;  %v4127_v61 = vcombine.low %v331_v46, %v335_v47 }
  0x8d   :  { %2643 = vmatpush2.bf16.msra.mxu1 %v3887_v41  ;;  %v183_v55 = vld [vmem:[%s6020_s1 + $0x4e8] sm:$0xff] }
  0x8e   :  { %2694 = vmatprep.subr.bf16.mxu1 %v4136_v43  ;;  %v323_v56 = vld [vmem:[%s6020_s1 + $0x948] sm:$0xff]  ;;  %v3976_v62 = vcombine.high %v179_v52, %v183_v55  ;;  %v3975_v4 = vcombine.low %v179_v52, %v183_v55 }
  0x8f   :  { %v327_v57 = vld [vmem:[%s6020_s1 + $0x968] sm:$0xff]  ;;  %2658 = vmatpush1.bf16.msra.mxu0 %v3991_v48 }
  0x90   :  { %2645 = vmatmul.mubr.bf16.vlgmr.msra.gmra.mxu1 %v4732_v16  ;;  %2659 = vmatprep.subr.bf16.mxu0 %v3984_v50  ;;  %v4120_v63 = vcombine.high %v323_v56, %v327_v57  ;;  %v171_v0 = vld [vmem:[%s6020_s1 + $0x488] sm:$0xff]  ;;  %v4119_v5 = vcombine.low %v323_v56, %v327_v57 }
  0x91   :  { %2695 = vmatpush1.bf16.msra.mxu1 %v4135_v49  ;;  %v175_v1 = vld [vmem:[%s6020_s1 + $0x4a8] sm:$0xff]  ;;  %2726 = vmatprep.mubr.bf16.mxu1 %v4758_v25 }
  0x92   :  { %2696 = vmatprep.subr.bf16.mxu1 %v4128_v51  ;;  %v315_v2 = vld [vmem:[%s6020_s1 + $0x908] sm:$0xff]  ;;  %v3968_v6 = vcombine.high %v171_v0, %v175_v1  ;;  %v3967_v12 = vcombine.low %v171_v0, %v175_v1 }
  0x93   :  { %v319_v3 = vld [vmem:[%s6020_s1 + $0x928] sm:$0xff]  ;;  %2660 = vmatpush1.bf16.msra.mxu0 %v3983_v60 }
  0x94   :  { %2661 = vmatprep.subr.bf16.mxu0 %v3976_v62  ;;  %v4112_v7 = vcombine.high %v315_v2, %v319_v3  ;;  %v163_v8 = vld [vmem:[%s6020_s1 + $0x448] sm:$0xff]  ;;  %v4111_v13 = vcombine.low %v315_v2, %v319_v3 }
  0x95   :  { %2697 = vmatpush1.bf16.msra.mxu1 %v4127_v61  ;;  %v167_v9 = vld [vmem:[%s6020_s1 + $0x468] sm:$0xff] }
  0x96   :  { %2698 = vmatprep.subr.bf16.mxu1 %v4120_v63  ;;  %v307_v10 = vld [vmem:[%s6020_s1 + $0x8c8] sm:$0xff]  ;;  %v3960_v14 = vcombine.high %v163_v8, %v167_v9  ;;  %v3959_v22 = vcombine.low %v163_v8, %v167_v9 }
  0x97   :  { %v311_v11 = vld [vmem:[%s6020_s1 + $0x8e8] sm:$0xff]  ;;  %2662 = vmatpush1.bf16.msra.mxu0 %v3975_v4 }
  0x98   :  { %2663 = vmatprep.subr.bf16.mxu0 %v3968_v6  ;;  %v4104_v15 = vcombine.high %v307_v10, %v311_v11  ;;  %v155_v17 = vld [vmem:[%s6020_s1 + $0x408] sm:$0xff]  ;;  %v4103_v23 = vcombine.low %v307_v10, %v311_v11 }
  0x99   :  { %2699 = vmatpush1.bf16.msra.mxu1 %v4119_v5  ;;  %v159_v18 = vld [vmem:[%s6020_s1 + $0x428] sm:$0xff] }
  0x9a   :  { %2700 = vmatprep.subr.bf16.mxu1 %v4112_v7  ;;  %v299_v20 = vld [vmem:[%s6020_s1 + $0x888] sm:$0xff]  ;;  %v3952_v24 = vcombine.high %v155_v17, %v159_v18  ;;  %v3951_v30 = vcombine.low %v155_v17, %v159_v18 }
  0x9b   :  { %v303_v53 = vld [vmem:[%s6020_s1 + $0x8a8] sm:$0xff]  ;;  %2664 = vmatpush1.bf16.msra.mxu0 %v3967_v12 }
  0x9c   :  { %2665 = vmatprep.subr.bf16.mxu0 %v3960_v14  ;;  %v4096_v54 = vcombine.high %v299_v20, %v303_v53  ;;  %v275_v26 = vld [vmem:[%s6020_s1 + $0x7c8] sm:$0xff]  ;;  %v4095_v33 = vcombine.low %v299_v20, %v303_v53 }
  0x9d   :  { %2701 = vmatpush1.bf16.msra.mxu1 %v4111_v13  ;;  %v279_v27 = vld [vmem:[%s6020_s1 + $0x7e8] sm:$0xff] }
  0x9e   :  { %2702 = vmatprep.subr.bf16.mxu1 %v4104_v15  ;;  %v291_v28 = vld [vmem:[%s6020_s1 + $0x848] sm:$0xff]  ;;  %v4072_v34 = vcombine.high %v275_v26, %v279_v27  ;;  %v4071_v39 = vcombine.low %v275_v26, %v279_v27 }
  0x9f   :  { %v295_v29 = vld [vmem:[%s6020_s1 + $0x868] sm:$0xff]  ;;  %2666 = vmatpush1.bf16.msra.mxu0 %v3959_v22 }
  0xa0   :  { %2667 = vmatprep.subr.bf16.mxu0 %v3952_v24  ;;  %v4088_v35 = vcombine.high %v291_v28, %v295_v29  ;;  %v267_v36 = vld [vmem:[%s6020_s1 + $0x788] sm:$0xff]  ;;  %v4087_v40 = vcombine.low %v291_v28, %v295_v29 }
  0xa1   :  { %2703 = vmatpush1.bf16.msra.mxu1 %v4103_v23  ;;  %v271_v37 = vld [vmem:[%s6020_s1 + $0x7a8] sm:$0xff] }
  0xa2   :  { %2704 = vmatprep.subr.bf16.mxu1 %v4096_v54  ;;  %v283_v38 = vld [vmem:[%s6020_s1 + $0x808] sm:$0xff]  ;;  %v4064_v41 = vcombine.high %v267_v36, %v271_v37  ;;  %v4063_v47 = vcombine.low %v267_v36, %v271_v37 }
  0xa3   :  { %v287_v21 = vld [vmem:[%s6020_s1 + $0x828] sm:$0xff]  ;;  %2668 = vmatpush1.bf16.msra.mxu0 %v3951_v30 }
  0xa4   :  { %2669 = vmatprep.subr.bf16.mxu0 %v4072_v34  ;;  %v4080_v42 = vcombine.high %v283_v38, %v287_v21  ;;  %v259_v43 = vld [vmem:[%s6020_s1 + $0x748] sm:$0xff]  ;;  %v4079_v48 = vcombine.low %v283_v38, %v287_v21 }
  0xa5   :  { %2705 = vmatpush1.bf16.msra.mxu1 %v4095_v33  ;;  %v263_v44 = vld [vmem:[%s6020_s1 + $0x768] sm:$0xff] }
  0xa6   :  { %2706 = vmatprep.subr.bf16.mxu1 %v4088_v35  ;;  %v403_v45 = vld [vmem:[%s6020_s1 + $0xbc8] sm:$0xff]  ;;  %v4056_v49 = vcombine.high %v259_v43, %v263_v44  ;;  %v4055_v57 = vcombine.low %v259_v43, %v263_v44  ;;  %v88_v43 = vld [vmem:[%s6020_s1 + $0x1f0] sm:$0xff] }
  0xa7   :  { %v407_v46 = vld [vmem:[%s6020_s1 + $0xbe8] sm:$0xff]  ;;  %2670 = vmatpush2.bf16.msra.mxu0 %v4071_v39 }
  0xa8   :  { %2671 = vmatprep.subr.bf16.mxu0 %v4064_v41  ;;  %v4200_v50 = vcombine.high %v403_v45, %v407_v46  ;;  %v251_v51 = vld [vmem:[%s6020_s1 + $0x708] sm:$0xff]  ;;  %v4199_v60 = vcombine.low %v403_v45, %v407_v46 }
  0xa9   :  { %2707 = vmatpush1.bf16.msra.mxu1 %v4087_v40  ;;  %v255_v52 = vld [vmem:[%s6020_s1 + $0x728] sm:$0xff] }
  0xaa   :  { %2708 = vmatprep.subr.bf16.mxu1 %v4080_v42  ;;  %v395_v55 = vld [vmem:[%s6020_s1 + $0xb88] sm:$0xff]  ;;  %v4048_v61 = vcombine.high %v251_v51, %v255_v52  ;;  %v4047_v3 = vcombine.low %v251_v51, %v255_v52  ;;  %v84_v42 = vld [vmem:[%s6020_s1 + $0x1d0] sm:$0xff] }
  0xab   :  { %v399_v56 = vld [vmem:[%s6020_s1 + $0xba8] sm:$0xff]  ;;  %2672 = vmatpush2.bf16.msra.mxu0 %v4063_v47  ;;  %v216_v51 = vld [vmem:[%s6020_s1 + $0x5f0] sm:$0xff] }
  0xac   :  { %2673 = vmatprep.subr.bf16.mxu0 %v4056_v49  ;;  %v4192_v62 = vcombine.high %v395_v55, %v399_v56  ;;  %v243_v63 = vld [vmem:[%s6020_s1 + $0x6c8] sm:$0xff]  ;;  %v4191_v4 = vcombine.low %v395_v55, %v399_v56  ;;  %v76_v56 = vld [vmem:[%s6020_s1 + $0x190] sm:$0xff] }
  0xad   :  { %2709 = vmatpush1.bf16.msra.mxu1 %v4079_v48  ;;  %v247_v0 = vld [vmem:[%s6020_s1 + $0x6e8] sm:$0xff]  ;;  %v3882_v48 = vcombine.high %v84_v42, %v88_v43 }
  0xae   :  { %2710 = vmatprep.subr.bf16.mxu1 %v4200_v50  ;;  %v387_v1 = vld [vmem:[%s6020_s1 + $0xb48] sm:$0xff]  ;;  %v4040_v5 = vcombine.high %v243_v63, %v247_v0  ;;  %v4039_v11 = vcombine.low %v243_v63, %v247_v0  ;;  %v212_v50 = vld [vmem:[%s6020_s1 + $0x5d0] sm:$0xff] }
  0xaf   :  { %v391_v2 = vld [vmem:[%s6020_s1 + $0xb68] sm:$0xff]  ;;  %2674 = vmatpush2.bf16.msra.mxu0 %v4055_v57  ;;  %v4010_v55 = vcombine.high %v212_v50, %v216_v51  ;;  %v80_v57 = vld [vmem:[%s6020_s1 + $0x1b0] sm:$0xff]  ;;  %v4009_v63 = vcombine.low %v212_v50, %v216_v51 }
  0xb0   :  { %2675 = vmatprep.subr.bf16.mxu0 %v4048_v61  ;;  %v4184_v6 = vcombine.high %v387_v1, %v391_v2  ;;  %v235_v7 = vld [vmem:[%s6020_s1 + $0x688] sm:$0xff]  ;;  %v4183_v12 = vcombine.low %v387_v1, %v391_v2  ;;  %v208_v61 = vld [vmem:[%s6020_s1 + $0x5b0] sm:$0xff]  ;;  %v3874_v0 = vcombine.high %v76_v56, %v80_v57 }
  0xb1   :  { %2711 = vmatpush2.bf16.msra.mxu1 %v4199_v60  ;;  %v239_v8 = vld [vmem:[%s6020_s1 + $0x6a8] sm:$0xff]  ;;  %v204_v60 = vld [vmem:[%s6020_s1 + $0x590] sm:$0xff] }
  0xb2   :  { %2712 = vmatprep.subr.bf16.mxu1 %v4192_v62  ;;  %v379_v9 = vld [vmem:[%s6020_s1 + $0xb08] sm:$0xff]  ;;  %v4032_v13 = vcombine.high %v235_v7, %v239_v8  ;;  %v4031_v53 = vcombine.low %v235_v7, %v239_v8  ;;  %v3881_v62 = vcombine.low %v84_v42, %v88_v43  ;;  %v4002_v1 = vcombine.high %v204_v60, %v208_v61  ;;  %v68_v2 = vld [vmem:[%s6020_s1 + $0x150] sm:$0xff] }
  0xb3   :  { %v383_v10 = vld [vmem:[%s6020_s1 + $0xb28] sm:$0xff]  ;;  %2676 = vmatpush2.bf16.msra.mxu0 %v4047_v3  ;;  %v72_v3 = vld [vmem:[%s6020_s1 + $0x170] sm:$0xff]  ;;  %v3873_v7 = vcombine.low %v76_v56, %v80_v57  ;;  %v4001_v8 = vcombine.low %v204_v60, %v208_v61 }
  0xb4   :  { %2677 = vmatprep.subr.bf16.mxu0 %v4040_v5  ;;  %v4176_v14 = vcombine.high %v379_v9, %v383_v10  ;;  %v227_v15 = vld [vmem:[%s6020_s1 + $0x648] sm:$0xff]  ;;  %v4175_v22 = vcombine.low %v379_v9, %v383_v10  ;;  %v196_v5 = vld [vmem:[%s6020_s1 + $0x550] sm:$0xff]  ;;  %v3866_v9 = vcombine.high %v68_v2, %v72_v3 }
  0xb5   :  { %2713 = vmatpush2.bf16.msra.mxu1 %v4191_v4  ;;  %v231_v17 = vld [vmem:[%s6020_s1 + $0x668] sm:$0xff]  ;;  %v5177_v4 = vld [vmem:[%s6019_s0 + $0x18] ss:$0 sps:$4 sm:$0xff]   ;;  %v148_v56 = vld [vmem:[%s6020_s1 + $0x3d0] sm:$0xff] }
  0xb6   :  { %2714 = vmatprep.subr.bf16.mxu1 %v4184_v6  ;;  %v371_v18 = vld [vmem:[%s6020_s1 + $0xac8] sm:$0xff]  ;;  %v4024_v23 = vcombine.high %v227_v15, %v231_v17  ;;  %v4023_v29 = vcombine.low %v227_v15, %v231_v17  ;;  %v200_v6 = vld [vmem:[%s6020_s1 + $0x570] sm:$0xff]  ;;  %v3865_v15 = vcombine.low %v68_v2, %v72_v3 }
  0xb7   :  { %v375_v20 = vld [vmem:[%s6020_s1 + $0xae8] sm:$0xff]  ;;  %2678 = vmatpush2.bf16.msra.mxu0 %v4039_v11  ;;  %v3994_v10 = vcombine.high %v196_v5, %v200_v6  ;;  %v60_v11 = vld [vmem:[%s6020_s1 + $0x110] sm:$0xff]  ;;  %v3993_v17 = vcombine.low %v196_v5, %v200_v6 }
  0xb8   :  { %2679 = vmatprep.subr.bf16.mxu0 %v4032_v13  ;;  %v4168_v24 = vcombine.high %v371_v18, %v375_v20  ;;  %v219_v54 = vld [vmem:[%s6020_s1 + $0x608] sm:$0xff]  ;;  %v4167_v30 = vcombine.low %v371_v18, %v375_v20  ;;  %v188_v13 = vld [vmem:[%s6020_s1 + $0x510] sm:$0xff] }
  0xb9   :  { %2715 = vmatpush2.bf16.msra.mxu1 %v4183_v12  ;;  %v223_v26 = vld [vmem:[%s6020_s1 + $0x628] sm:$0xff]  ;;  %v64_v12 = vld [vmem:[%s6020_s1 + $0x130] sm:$0xff] }
  0xba   :  { %2716 = vmatprep.subr.bf16.mxu1 %v4176_v14  ;;  %v363_v27 = vld [vmem:[%s6020_s1 + $0xa88] sm:$0xff]  ;;  %v4016_v33 = vcombine.high %v219_v54, %v223_v26  ;;  %v4015_v21 = vcombine.low %v219_v54, %v223_v26  ;;  %v192_v14 = vld [vmem:[%s6020_s1 + $0x530] sm:$0xff]  ;;  %v3858_v18 = vcombine.high %v60_v11, %v64_v12  ;;  %v3857_v54 = vcombine.low %v60_v11, %v64_v12 }
  0xbb   :  { %v367_v28 = vld [vmem:[%s6020_s1 + $0xaa8] sm:$0xff]  ;;  %2680 = vmatpush2.bf16.msra.mxu0 %v4031_v53  ;;  %v3986_v20 = vcombine.high %v188_v13, %v192_v14  ;;  %v52_v53 = vld [vmem:[%s6020_s1 + $0xd0] sm:$0xff]  ;;  %v3985_v26 = vcombine.low %v188_v13, %v192_v14 }
  0xbc   :  { %2681 = vmatprep.subr.bf16.mxu0 %v4024_v23  ;;  %v4160_v34 = vcombine.high %v363_v27, %v367_v28  ;;  %v411_v35 = vld [vmem:[%s6020_s1 + $0xc08] sm:$0xff]  ;;  %v4159_v39 = vcombine.low %v363_v27, %v367_v28  ;;  %v180_v23 = vld [vmem:[%s6020_s1 + $0x4d0] sm:$0xff] }
  0xbd   :  { %2717 = vmatpush2.bf16.msra.mxu1 %v4175_v22  ;;  %v415_v36 = vld [vmem:[%s6020_s1 + $0xc28] sm:$0xff]  ;;  %v56_v22 = vld [vmem:[%s6020_s1 + $0xf0] sm:$0xff] }
  0xbe   :  { %2718 = vmatprep.subr.bf16.mxu1 %v4168_v24  ;;  %v355_v37 = vld [vmem:[%s6020_s1 + $0xa48] sm:$0xff]  ;;  %v4208_v40 = vcombine.high %v411_v35, %v415_v36  ;;  %v4207_v46 = vcombine.low %v411_v35, %v415_v36  ;;  %v184_v24 = vld [vmem:[%s6020_s1 + $0x4f0] sm:$0xff]  ;;  %v3850_v27 = vcombine.high %v52_v53, %v56_v22  ;;  %v3849_v35 = vcombine.low %v52_v53, %v56_v22 }
  0xbf   :  { %v359_v38 = vld [vmem:[%s6020_s1 + $0xa68] sm:$0xff]  ;;  %2682 = vmatpush2.bf16.msra.mxu0 %v4023_v29  ;;  %v3978_v28 = vcombine.high %v180_v23, %v184_v24  ;;  %v44_v29 = vld [vmem:[%s6020_s1 + $0x90] sm:$0xff]  ;;  %v3977_v36 = vcombine.low %v180_v23, %v184_v24 }
  0xc0   :  { %2683 = vmatprep.subr.bf16.mxu0 %v4016_v33  ;;  %v4152_v41 = vcombine.high %v355_v37, %v359_v38  ;;  %v347_v44 = vld [vmem:[%s6020_s1 + $0xa08] sm:$0xff]  ;;  %v4151_v47 = vcombine.low %v355_v37, %v359_v38  ;;  %v172_v33 = vld [vmem:[%s6020_s1 + $0x490] sm:$0xff] }
  0xc1   :  { %2719 = vmatpush2.bf16.msra.mxu1 %v4167_v30  ;;  %v351_v45 = vld [vmem:[%s6020_s1 + $0xa28] sm:$0xff]  ;;  %v48_v30 = vld [vmem:[%s6020_s1 + $0xb0] sm:$0xff] }
  0xc2   :  { %2720 = vmatprep.subr.bf16.mxu1 %v4160_v34  ;;  %v4144_v49 = vcombine.high %v347_v44, %v351_v45  ;;  %v4143_v52 = vcombine.low %v347_v44, %v351_v45  ;;  %v176_v34 = vld [vmem:[%s6020_s1 + $0x4b0] sm:$0xff]  ;;  %v3842_v37 = vcombine.high %v44_v29, %v48_v30  ;;  %v3841_v42 = vcombine.low %v44_v29, %v48_v30 }
  0xc3   :  { %2684 = vmatpush2.bf16.msra.mxu0 %v4015_v21  ;;  %v3970_v38 = vcombine.high %v172_v33, %v176_v34  ;;  %v36_v21 = vld [vmem:[%s6020_s1 + $0x50] sm:$0xff]  ;;  %v3969_v43 = vcombine.low %v172_v33, %v176_v34 }
  0xc4   :  { %2749 = vmatprep.subr.bf16.mxu0 %v4208_v40  ;;  %v164_v40 = vld [vmem:[%s6020_s1 + $0x450] sm:$0xff] }
  0xc5   :  { %2721 = vmatpush2.bf16.msra.mxu1 %v4159_v39  ;;  %v40_v39 = vld [vmem:[%s6020_s1 + $0x70] sm:$0xff] }
  0xc6   :  { %2722 = vmatprep.subr.bf16.mxu1 %v4152_v41  ;;  %2686 = vmatmul.mubr.bf16.vlgmr.msra.gmra.mxu0 %v4742_v19  ;;  %v168_v41 = vld [vmem:[%s6020_s1 + $0x470] sm:$0xff]  ;;  %v3834_v44 = vcombine.high %v36_v21, %v40_v39  ;;  %v3833_v50 = vcombine.low %v36_v21, %v40_v39 }
  0xc7   :  { %2750 = vmatpush1.bf16.msra.mxu0 %v4207_v46  ;;  %2767 = vmatprep.mubr.bf16.mxu0 %v4468_v31  ;;  %v3962_v45 = vcombine.high %v164_v40, %v168_v41  ;;  %v28_v46 = vld [vmem:[%s6020_s1 + $0x10] sm:$0xff]  ;;  %v3961_v51 = vcombine.low %v164_v40, %v168_v41 }
  0xc8   :  { %2776 = vmatprep.subr.bf16.mxu0 %v3882_v48  ;;  %v156_v48 = vld [vmem:[%s6020_s1 + $0x410] sm:$0xff] }
  0xc9   :  { %2723 = vmatpush2.bf16.msra.mxu1 %v4151_v47  ;;  %v32_v47 = vld [vmem:[%s6020_s1 + $0x30] sm:$0xff] }
  0xca   :  { %2724 = vmatprep.subr.bf16.mxu1 %v4144_v49  ;;  %v160_v49 = vld [vmem:[%s6020_s1 + $0x430] sm:$0xff] }
  0xcb   :  { %v152_v57 = vld [vmem:[%s6020_s1 + $0x3f0] sm:$0xff] }
  0xcc   :  { %v276_v60 = vld [vmem:[%s6020_s1 + $0x7d0] sm:$0xff] }
  0xcd   :  { %2725 = vmatpush2.bf16.msra.mxu1 %v4143_v52  ;;  %v3826_v52 = vcombine.high %v28_v46, %v32_v47  ;;  %v280_v61 = vld [vmem:[%s6020_s1 + $0x7f0] sm:$0xff] }
  0xce   :  { %2817 = vmatprep.subr.bf16.mxu1 %v4010_v55  ;;  %4214 = vmatmul.mubr.msk.bf16.vlgmr.msra.gmra.mxu0 %vm2444_vm0, %v5177_v4  ;;  %v3954_v55 = vcombine.high %v156_v48, %v160_v49  ;;  %v140_v2 = vld [vmem:[%s6020_s1 + $0x390] sm:$0xff] }
  0xcf   :  { %2777 = vmatpush1.bf16.msra.mxu0 %v3881_v62  ;;  %2808 = vmatprep.mubr.bf16.mxu0 %v4602_v58  ;;  %v3825_v62 = vcombine.low %v28_v46, %v32_v47  ;;  %v144_v3 = vld [vmem:[%s6020_s1 + $0x3b0] sm:$0xff] }
  0xd0   :  { %2727 = vmatmul.mubr.bf16.vlgmr.msra.gmra.mxu1 %v4950_v32  ;;  %2778 = vmatprep.subr.bf16.mxu0 %v3874_v0  ;;  %v3946_v0 = vcombine.high %v148_v56, %v152_v57  ;;  %v268_v5 = vld [vmem:[%s6020_s1 + $0x790] sm:$0xff] }
  0xd1   :  { %2818 = vmatpush1.bf16.msra.mxu1 %v4009_v63  ;;  %2849 = vmatprep.mubr.bf16.mxu1 %v4606_v59  ;;  %v3953_v63 = vcombine.low %v156_v48, %v160_v49  ;;  %v272_v6 = vld [vmem:[%s6020_s1 + $0x7b0] sm:$0xff] }
  0xd2   :  { %2819 = vmatprep.subr.bf16.mxu1 %v4002_v1  ;;  %v4074_v1 = vcombine.high %v276_v60, %v280_v61  ;;  %v132_v11 = vld [vmem:[%s6020_s1 + $0x350] sm:$0xff] }
  0xd3   :  { %2779 = vmatpush1.bf16.msra.mxu0 %v3873_v7  ;;  %v3945_v7 = vcombine.low %v148_v56, %v152_v57  ;;  %v136_v12 = vld [vmem:[%s6020_s1 + $0x370] sm:$0xff] }
  0xd4   :  { %2780 = vmatprep.subr.bf16.mxu0 %v3866_v9  ;;  %v3938_v9 = vcombine.high %v140_v2, %v144_v3  ;;  %v260_v13 = vld [vmem:[%s6020_s1 + $0x750] sm:$0xff] }
  0xd5   :  { %2820 = vmatpush1.bf16.msra.mxu1 %v4001_v8  ;;  %v4073_v8 = vcombine.low %v276_v60, %v280_v61  ;;  %v264_v14 = vld [vmem:[%s6020_s1 + $0x770] sm:$0xff]  ;;  %v5340_v60 = vld [vmem:[%s6021_s2] sm:$0xff] }
  0xd6   :  { %2821 = vmatprep.subr.bf16.mxu1 %v3994_v10  ;;  %v4066_v10 = vcombine.high %v268_v5, %v272_v6  ;;  %v124_v53 = vld [vmem:[%s6020_s1 + $0x310] sm:$0xff] }
  0xd7   :  { %2781 = vmatpush1.bf16.msra.mxu0 %v3865_v15  ;;  %v3937_v15 = vcombine.low %v140_v2, %v144_v3  ;;  %v128_v22 = vld [vmem:[%s6020_s1 + $0x330] sm:$0xff] }
  0xd8   :  { %2782 = vmatprep.subr.bf16.mxu0 %v3858_v18  ;;  %v3930_v18 = vcombine.high %v132_v11, %v136_v12  ;;  %v252_v23 = vld [vmem:[%s6020_s1 + $0x710] sm:$0xff] }
  0xd9   :  { %2822 = vmatpush1.bf16.msra.mxu1 %v3993_v17  ;;  %v4065_v17 = vcombine.low %v268_v5, %v272_v6  ;;  %v256_v24 = vld [vmem:[%s6020_s1 + $0x730] sm:$0xff] }
  0xda   :  { %2823 = vmatprep.subr.bf16.mxu1 %v3986_v20  ;;  %v4058_v20 = vcombine.high %v260_v13, %v264_v14  ;;  %v116_v29 = vld [vmem:[%s6020_s1 + $0x2d0] sm:$0xff] }
  0xdb   :  { %2783 = vmatpush1.bf16.msra.mxu0 %v3857_v54  ;;  %v3929_v54 = vcombine.low %v132_v11, %v136_v12  ;;  %v120_v30 = vld [vmem:[%s6020_s1 + $0x2f0] sm:$0xff] }
  0xdc   :  { %2784 = vmatprep.subr.bf16.mxu0 %v3850_v27  ;;  %v3922_v27 = vcombine.high %v124_v53, %v128_v22  ;;  %v244_v33 = vld [vmem:[%s6020_s1 + $0x6d0] sm:$0xff] }
  0xdd   :  { %2824 = vmatpush1.bf16.msra.mxu1 %v3985_v26  ;;  %v4057_v26 = vcombine.low %v260_v13, %v264_v14  ;;  %v248_v34 = vld [vmem:[%s6020_s1 + $0x6f0] sm:$0xff] }
  0xde   :  { %2825 = vmatprep.subr.bf16.mxu1 %v3978_v28  ;;  %v4050_v28 = vcombine.high %v252_v23, %v256_v24  ;;  %v4042_v21 = vcombine.high %v244_v33, %v248_v34  ;;  %v108_v39 = vld [vmem:[%s6020_s1 + $0x290] sm:$0xff] }
  0xdf   :  { %2785 = vmatpush1.bf16.msra.mxu0 %v3849_v35  ;;  %v3921_v35 = vcombine.low %v124_v53, %v128_v22  ;;  %v112_v40 = vld [vmem:[%s6020_s1 + $0x2b0] sm:$0xff] }
  0xe0   :  { %2786 = vmatprep.subr.bf16.mxu0 %v3842_v37  ;;  %v4049_v37 = vcombine.low %v252_v23, %v256_v24  ;;  %v236_v41 = vld [vmem:[%s6020_s1 + $0x690] sm:$0xff]  ;;  %v3906_v46 = vcombine.high %v108_v39, %v112_v40 }
  0xe1   :  { %2826 = vmatpush1.bf16.msra.mxu1 %v3977_v36  ;;  %v420_v36 = vlaneseq  ;;  %v100_v48 = vld [vmem:[%s6020_s1 + $0x250] sm:$0xff] }
  0xe2   :  { %2827 = vmatprep.subr.bf16.mxu1 %v3970_v38  ;;  %v3914_v38 = vcombine.high %v116_v29, %v120_v30  ;;  %v104_v49 = vld [vmem:[%s6020_s1 + $0x270] sm:$0xff] }
  0xe3   :  { %2787 = vmatpush1.bf16.msra.mxu0 %v3841_v42  ;;  %v240_v42 = vld [vmem:[%s6020_s1 + $0x6b0] sm:$0xff]  ;;  %v3898_v57 = vcombine.high %v100_v48, %v104_v49  ;;  %v3897_v3 = vcombine.low %v100_v48, %v104_v49 }
  0xe4   :  { %2788 = vmatprep.subr.bf16.mxu0 %v3834_v44  ;;  %v5322_v44 = vshrl.u32 %v420_v36, 7  ;;  %v4034_v47 = vcombine.high %v236_v41, %v240_v42  ;;  %v4033_v56 = vcombine.low %v236_v41, %v240_v42  ;;  %v224_v2 = vld [vmem:[%s6020_s1 + $0x630] sm:$0xff] }
  0xe5   :  { %2828 = vmatpush1.bf16.msra.mxu1 %v3969_v43  ;;  %v3913_v43 = vcombine.low %v116_v29, %v120_v30  ;;  %v344_v11 = vld [vmem:[%s6020_s1 + $0x9f0] sm:$0xff]  ;;  %v85_v30 = vld [vmem:[%s6020_s1 + $0x1d8] sm:$0xff] }
  0xe6   :  { %2829 = vmatprep.subr.bf16.mxu1 %v3962_v45  ;;  %v4041_v45 = vcombine.low %v244_v33, %v248_v34  ;;  %v412_v13 = vld [vmem:[%s6020_s1 + $0xc10] sm:$0xff]  ;;  %v89_v33 = vld [vmem:[%s6020_s1 + $0x1f8] sm:$0xff] }
  0xe7   :  { %2789 = vmatpush1.bf16.msra.mxu0 %v3833_v50  ;;  %v228_v50 = vld [vmem:[%s6020_s1 + $0x650] sm:$0xff] }
  0xe8   :  { %2790 = vmatprep.subr.bf16.mxu0 %v3826_v52  ;;  %v3905_v52 = vcombine.low %v108_v39, %v112_v40  ;;  %v416_v14 = vld [vmem:[%s6020_s1 + $0xc30] sm:$0xff]  ;;  %v3884_v40 = vcombine.high %v85_v30, %v89_v33 }
  0xe9   :  { %2830 = vmatpush1.bf16.msra.mxu1 %v3961_v51  ;;  %v232_v51 = vld [vmem:[%s6020_s1 + $0x670] sm:$0xff] }
  0xea   :  { %2831 = vmatprep.subr.bf16.mxu1 %v3954_v55  ;;  %v422_v55 = vsub.s32 0, %v5322_v44  ;;  %v4026_v61 = vcombine.high %v228_v50, %v232_v51  ;;  %v4025_v6 = vcombine.low %v228_v50, %v232_v51  ;;  %v324_v41 = vld [vmem:[%s6020_s1 + $0x950] sm:$0xff]  ;;  %v77_v50 = vld [vmem:[%s6020_s1 + $0x198] sm:$0xff] }
  0xeb   :  { %2791 = vmatpush1.bf16.msra.mxu0 %v3825_v62  ;;  %v426_v62 = vsub.s32 1, %v5322_v44  ;;  %v328_v42 = vld [vmem:[%s6020_s1 + $0x970] sm:$0xff]  ;;  %v81_v51 = vld [vmem:[%s6020_s1 + $0x1b8] sm:$0xff] }
  0xec   :  { %2792 = vmatprep.subr.bf16.mxu0 %v3946_v0  ;;  %v96_v0 = vld [vmem:[%s6020_s1 + $0x230] sm:$0xff]  ;;  %v423_v5 = vrot.slane %v5340_v60, %v422_v55  ;;  %v4121_v55 = vcombine.low %v324_v41, %v328_v42 }
  0xed   :  { %2832 = vmatpush1.bf16.msra.mxu1 %v3953_v63  ;;  %v92_v63 = vld [vmem:[%s6020_s1 + $0x210] sm:$0xff] }
  0xee   :  { %2833 = vmatprep.subr.bf16.mxu1 %v4074_v1  ;;  %v220_v1 = vld [vmem:[%s6020_s1 + $0x610] sm:$0xff] }
  0xef   :  { %2793 = vmatpush2.bf16.msra.mxu0 %v3945_v7  ;;  %v3890_v7 = vcombine.high %v92_v63, %v96_v0  ;;  %v4017_v53 = vcombine.low %v220_v1, %v224_v2  ;;  %v316_v48 = vld [vmem:[%s6020_s1 + $0x910] sm:$0xff] }
  0xf0   :  { %2794 = vmatprep.subr.bf16.mxu0 %v3938_v9  ;;  %v4018_v9 = vcombine.high %v220_v1, %v224_v2  ;;  %v320_v49 = vld [vmem:[%s6020_s1 + $0x930] sm:$0xff]  ;;  %v69_v1 = vld [vmem:[%s6020_s1 + $0x158] sm:$0xff] }
  0xf1   :  { %2834 = vmatpush2.bf16.msra.mxu1 %v4073_v8  ;;  %v427_v8 = vrot.slane %v5340_v60, %v426_v62  ;;  %v3876_v62 = vcombine.high %v77_v50, %v81_v51  ;;  %v73_v2 = vld [vmem:[%s6020_s1 + $0x178] sm:$0xff] }
  0xf2   :  { %2835 = vmatprep.subr.bf16.mxu1 %v4066_v10  ;;  %v340_v10 = vld [vmem:[%s6020_s1 + $0x9d0] sm:$0xff] }
  0xf3   :  { %2795 = vmatpush2.bf16.msra.mxu0 %v3937_v15  ;;  %v4138_v22 = vcombine.high %v340_v10, %v344_v11  ;;  %v4137_v36 = vcombine.low %v340_v10, %v344_v11  ;;  %v65_v10 = vld [vmem:[%s6020_s1 + $0x138] sm:$0xff] }
  0xf4   :  { %2796 = vmatprep.subr.bf16.mxu0 %v3930_v18  ;;  %v3889_v18 = vcombine.low %v92_v63, %v96_v0  ;;  %v308_v63 = vld [vmem:[%s6020_s1 + $0x8d0] sm:$0xff] }
  0xf5   :  { %2836 = vmatpush2.bf16.msra.mxu1 %v4065_v17  ;;  %v312_v0 = vld [vmem:[%s6020_s1 + $0x8f0] sm:$0xff] }
  0xf6   :  { %2837 = vmatprep.subr.bf16.mxu1 %v4058_v20  ;;  %v4105_v11 = vcombine.low %v308_v63, %v312_v0 }
  0xf7   :  { %2797 = vmatpush2.bf16.msra.mxu0 %v3929_v54 }
  0xf8   :  { %2798 = vmatprep.subr.bf16.mxu0 %v3922_v27  ;;  %v332_v27 = vld [vmem:[%s6020_s1 + $0x990] sm:$0xff] }
  0xf9   :  { %2838 = vmatpush2.bf16.msra.mxu1 %v4057_v26  ;;  %v4210_v26 = vcombine.high %v412_v13, %v416_v14 }
  0xfa   :  { %2839 = vmatprep.subr.bf16.mxu1 %v4050_v28  ;;  %v336_v28 = vld [vmem:[%s6020_s1 + $0x9b0] sm:$0xff] }
  0xfb   :  { %2799 = vmatpush2.bf16.msra.mxu0 %v3921_v35 }
  0xfc   :  { %2800 = vmatprep.subr.bf16.mxu0 %v3914_v38  ;;  %v4209_v38 = vcombine.low %v412_v13, %v416_v14 }
  0xfd   :  { %2840 = vmatpush2.bf16.msra.mxu1 %v4049_v37 }
  0xfe   :  { %2841 = vmatprep.subr.bf16.mxu1 %v4042_v21  ;;  %v4130_v21 = vcombine.high %v332_v27, %v336_v28 }
  0xff   :  { %2801 = vmatpush2.bf16.msra.mxu0 %v3913_v43 }
 0x100   :  { %2802 = vmatprep.subr.bf16.mxu0 %v3906_v46  ;;  %v4122_v46 = vcombine.high %v324_v41, %v328_v42 }
 0x101   :  { %2842 = vmatpush2.bf16.msra.mxu1 %v4041_v45  ;;  %v4129_v45 = vcombine.low %v332_v27, %v336_v28  ;;  %v45_v27 = vld [vmem:[%s6020_s1 + $0x98] sm:$0xff] }
 0x102   :  { %2843 = vmatprep.subr.bf16.mxu1 %v4034_v47  ;;  %v49_v28 = vld [vmem:[%s6020_s1 + $0xb8] sm:$0xff] }
 0x103   :  { %2803 = vmatpush2.bf16.msra.mxu0 %v3905_v52 }
 0x104   :  { %2804 = vmatprep.subr.bf16.mxu0 %v3898_v57  ;;  %v4114_v57 = vcombine.high %v316_v48, %v320_v49 }
 0x105   :  { %2844 = vmatpush2.bf16.msra.mxu1 %v4033_v56  ;;  %v3883_v56 = vcombine.low %v85_v30, %v89_v33 }
 0x106   :  { %2845 = vmatprep.subr.bf16.mxu1 %v4026_v61  ;;  %v2482_v12 = vpop.f32.mrf.mxu0 }
 0x107   :  { %v2483_v15 = vadd.f32 %v2482_v12, %v423_v5  ;;  %2805 = vmatpush2.bf16.msra.mxu0 %v3897_v3  ;;  %v4113_v3 = vcombine.low %v316_v48, %v320_v49  ;;  %v3875_v5 = vcombine.low %v77_v50, %v81_v51  ;;  %v3867_v12 = vcombine.low %v69_v1, %v73_v2  ;;  %v29_v48 = vld [vmem:[%s6020_s1 + $0x18] sm:$0xff] }
 0x108   :  { %v2523_v17 = vpop.f32.mrf.mxu1  ;;  %v2484_v20 = vpop.f32.mrf.mxu0  ;;  %2806 = vmatprep.subr.bf16.mxu0 %v3890_v7  ;;  %v3868_v7 = vcombine.high %v69_v1, %v73_v2  ;;  %v33_v49 = vld [vmem:[%s6020_s1 + $0x38] sm:$0xff] }
 0x109   :  { %2846 = vmatpush2.bf16.msra.mxu1 %v4025_v6  ;;  %v5369_v23 = vadd.f32 %v2523_v17, %v2483_v15  ;;  %v2485_v24 = vadd.f32 %v2484_v20, %v427_v8  ;;  %v4106_v6 = vcombine.high %v308_v63, %v312_v0  ;;  %v300_v8 = vld [vmem:[%s6020_s1 + $0x890] sm:$0xff]  ;;  %v53_v17 = vld [vmem:[%s6020_s1 + $0xd8] sm:$0xff]  ;;  %v3827_v0 = vcombine.low %v29_v48, %v33_v49 }
 0x10a   :  { %v2525_v54 = vpop.f32.mrf.mxu1  ;;  %2847 = vmatprep.subr.bf16.mxu1 %v4018_v9  ;;  %v2486_v29 = vpop.f32.mrf.mxu0  ;;  %v304_v9 = vld [vmem:[%s6020_s1 + $0x8b0] sm:$0xff] }
 0x10b   :  { %v5383_v34 = vadd.f32 %v2525_v54, %v2485_v24  ;;  %2807 = vmatpush2.bf16.msra.mxu0 %v3889_v18  ;;  %v4098_v13 = vcombine.high %v300_v8, %v304_v9  ;;  %v296_v15 = vld [vmem:[%s6020_s1 + $0x870] sm:$0xff]  ;;  %v57_v18 = vld [vmem:[%s6020_s1 + $0xf8] sm:$0xff]  ;;  %v4097_v20 = vcombine.low %v300_v8, %v304_v9 }
 0x10c   :  { %v2527_v35 = vpop.f32.mrf.mxu1  ;;  %v2487_v37 = vpop.f32.mrf.mxu0  ;;  %2858 = vmatprep.subr.bf16.mxu0 %v4138_v22  ;;  %v3852_v24 = vcombine.high %v53_v17, %v57_v18  ;;  %v284_v54 = vld [vmem:[%s6020_s1 + $0x810] sm:$0xff]  ;;  %v3851_v30 = vcombine.low %v53_v17, %v57_v18 }
 0x10d   :  { %2848 = vmatpush2.bf16.msra.mxu1 %v4017_v53  ;;  %v3844_v35 = vcombine.high %v45_v27, %v49_v28  ;;  %v408_v37 = vld [vmem:[%s6020_s1 + $0xbf0] sm:$0xff] }
 0x10e   :  { %v2528_v39 = vpop.f32.mrf.mxu1  ;;  %2913 = vmatprep.subr.bf16.mxu1 %v4210_v26  ;;  %2809 = vmatmul.mubr.bf16.vlgmr.msra.gmra.mxu0 %v4732_v16  ;;  %v288_v26 = vld [vmem:[%s6020_s1 + $0x830] sm:$0xff] }
 0x10f   :  { %2859 = vmatpush1.bf16.msra.mxu0 %v4137_v36  ;;  %2890 = vmatprep.mubr.bf16.mxu0 %v4758_v25  ;;  %v4082_v33 = vcombine.high %v284_v54, %v288_v26  ;;  %v404_v36 = vld [vmem:[%s6020_s1 + $0xbd0] sm:$0xff]  ;;  %v4081_v39 = vcombine.low %v284_v54, %v288_v26 }
 0x110   :  { %2850 = vmatmul.mubr.bf16.vlgmr.msra.gmra.mxu1 %v4742_v19  ;;  %v5393_v43 = vpop.f32.mrf.mxu1  ;;  %2860 = vmatprep.subr.bf16.mxu0 %v4130_v21  ;;  %v41_v21 = vld [vmem:[%s6020_s1 + $0x78] sm:$0xff]  ;;  %v4202_v41 = vcombine.high %v404_v36, %v408_v37  ;;  %v4201_v50 = vcombine.low %v404_v36, %v408_v37 }
 0x111   :  { %2914 = vmatpush1.bf16.msra.mxu1 %v4209_v38  ;;  %2931 = vmatprep.mubr.bf16.mxu1 %v4468_v31  ;;  %v37_v38 = vld [vmem:[%s6020_s1 + $0x58] sm:$0xff] }
 0x112   :  { %v5395_v47 = vpop.f32.mrf.mxu1  ;;  %2940 = vmatprep.subr.bf16.mxu1 %v3884_v40  ;;  %v3843_v40 = vcombine.low %v45_v27, %v49_v28  ;;  %v3836_v42 = vcombine.high %v37_v38, %v41_v21  ;;  %v3835_v51 = vcombine.low %v37_v38, %v41_v21 }
 0x113   :  { %2861 = vmatpush1.bf16.msra.mxu0 %v4129_v45  ;;  %v396_v45 = vld [vmem:[%s6020_s1 + $0xb90] sm:$0xff] }
 0x114   :  { %v2609_v52 = vpop.f32.mrf.mxu1  ;;  %2862 = vmatprep.subr.bf16.mxu0 %v4122_v46  ;;  %v400_v46 = vld [vmem:[%s6020_s1 + $0xbb0] sm:$0xff] }
 0x115   :  { %v4194_v52 = vcombine.high %v396_v45, %v400_v46  ;;  %v4193_v63 = vcombine.low %v396_v45, %v400_v46 }
 0x116   :  { %v2610_v61 = vpop.f32.mrf.mxu1 }
 0x117   :  { %2863 = vmatpush1.bf16.msra.mxu0 %v4121_v55  ;;  %v3828_v55 = vcombine.high %v29_v48, %v33_v49  ;;  %v149_v61 = vld [vmem:[%s6020_s1 + $0x3d8] sm:$0xff] }
 0x118   :  { %4215 = vmatmul.mubr.msk.bf16.vlgmr.msra.gmra.mxu1 %vm2444_vm0, %v5177_v4  ;;  %2864 = vmatprep.subr.bf16.mxu0 %v4114_v57  ;;  %v61_v4 = vld [vmem:[%s6020_s1 + $0x118] sm:$0xff]  ;;  %v392_v57 = vld [vmem:[%s6020_s1 + $0xb70] sm:$0xff] }
 0x119   :  { %2941 = vmatpush1.bf16.msra.mxu1 %v3883_v56  ;;  %2972 = vmatprep.mubr.bf16.mxu1 %v4602_v58  ;;  %v3860_v14 = vcombine.high %v61_v4, %v65_v10  ;;  %v292_v58 = vld [vmem:[%s6020_s1 + $0x850] sm:$0xff]  ;;  %v3859_v53 = vcombine.low %v61_v4, %v65_v10 }
 0x11a   :  { %2942 = vmatprep.subr.bf16.mxu1 %v3876_v62  ;;  %v4090_v22 = vcombine.high %v292_v58, %v296_v15  ;;  %v4089_v29 = vcombine.low %v292_v58, %v296_v15  ;;  %v388_v56 = vld [vmem:[%s6020_s1 + $0xb50] sm:$0xff]  ;;  %v153_v62 = vld [vmem:[%s6020_s1 + $0x3f8] sm:$0xff] }
 0x11b   :  { %2865 = vmatpush1.bf16.msra.mxu0 %v4113_v3  ;;  %v4186_v1 = vcombine.high %v388_v56, %v392_v57  ;;  %v3948_v2 = vcombine.high %v149_v61, %v153_v62  ;;  %v380_v3 = vld [vmem:[%s6020_s1 + $0xb10] sm:$0xff]  ;;  %v4185_v8 = vcombine.low %v388_v56, %v392_v57  ;;  %v3947_v9 = vcombine.low %v149_v61, %v153_v62  ;;  %v105_v56 = vld [vmem:[%s6020_s1 + $0x278] sm:$0xff] }
 0x11c   :  { %2866 = vmatprep.subr.bf16.mxu0 %v4106_v6  ;;  %v141_v6 = vld [vmem:[%s6020_s1 + $0x398] sm:$0xff] }
 0x11d   :  { %2943 = vmatpush1.bf16.msra.mxu1 %v3875_v5  ;;  %v384_v5 = vld [vmem:[%s6020_s1 + $0xb30] sm:$0xff] }
 0x11e   :  { %2944 = vmatprep.subr.bf16.mxu1 %v3868_v7  ;;  %v145_v7 = vld [vmem:[%s6020_s1 + $0x3b8] sm:$0xff]  ;;  %v4178_v4 = vcombine.high %v380_v3, %v384_v5  ;;  %v4177_v58 = vcombine.low %v380_v3, %v384_v5 }
 0x11f   :  { %2867 = vmatpush1.bf16.msra.mxu0 %v4105_v11  ;;  %v3940_v10 = vcombine.high %v141_v6, %v145_v7  ;;  %v372_v11 = vld [vmem:[%s6020_s1 + $0xad0] sm:$0xff]  ;;  %v3939_v15 = vcombine.low %v141_v6, %v145_v7  ;;  %v205_v5 = vld [vmem:[%s6020_s1 + $0x598] sm:$0xff] }
 0x120   :  { %2868 = vmatprep.subr.bf16.mxu0 %v4098_v13  ;;  %v133_v13 = vld [vmem:[%s6020_s1 + $0x358] sm:$0xff] }
 0x121   :  { %2945 = vmatpush1.bf16.msra.mxu1 %v3867_v12  ;;  %v376_v12 = vld [vmem:[%s6020_s1 + $0xaf0] sm:$0xff]  ;;  %v93_v7 = vld [vmem:[%s6020_s1 + $0x218] sm:$0xff] }
 0x122   :  { %2946 = vmatprep.subr.bf16.mxu1 %v3860_v14  ;;  %v137_v14 = vld [vmem:[%s6020_s1 + $0x378] sm:$0xff]  ;;  %v4170_v17 = vcombine.high %v372_v11, %v376_v12  ;;  %v4169_v54 = vcombine.low %v372_v11, %v376_v12 }
 0x123   :  { %2869 = vmatpush1.bf16.msra.mxu0 %v4097_v20  ;;  %v3932_v18 = vcombine.high %v133_v13, %v137_v14  ;;  %v364_v20 = vld [vmem:[%s6020_s1 + $0xa90] sm:$0xff]  ;;  %v3931_v26 = vcombine.low %v133_v13, %v137_v14  ;;  %v197_v12 = vld [vmem:[%s6020_s1 + $0x558] sm:$0xff] }
 0x124   :  { %2870 = vmatprep.subr.bf16.mxu0 %v4090_v22  ;;  %v125_v22 = vld [vmem:[%s6020_s1 + $0x318] sm:$0xff] }
 0x125   :  { %2947 = vmatpush1.bf16.msra.mxu1 %v3859_v53  ;;  %v368_v53 = vld [vmem:[%s6020_s1 + $0xab0] sm:$0xff]  ;;  %v201_v13 = vld [vmem:[%s6020_s1 + $0x578] sm:$0xff] }
 0x126   :  { %2948 = vmatprep.subr.bf16.mxu1 %v3852_v24  ;;  %v129_v24 = vld [vmem:[%s6020_s1 + $0x338] sm:$0xff]  ;;  %v4162_v27 = vcombine.high %v364_v20, %v368_v53  ;;  %v4161_v36 = vcombine.low %v364_v20, %v368_v53 }
 0x127   :  { %2871 = vmatpush1.bf16.msra.mxu0 %v4089_v29  ;;  %v3924_v28 = vcombine.high %v125_v22, %v129_v24  ;;  %v356_v29 = vld [vmem:[%s6020_s1 + $0xa50] sm:$0xff]  ;;  %v3923_v37 = vcombine.low %v125_v22, %v129_v24  ;;  %v345_v14 = vld [vmem:[%s6020_s1 + $0x9f8] sm:$0xff] }
 0x128   :  { %2872 = vmatprep.subr.bf16.mxu0 %v4082_v33  ;;  %v117_v33 = vld [vmem:[%s6020_s1 + $0x2d8] sm:$0xff] }
 0x129   :  { %2949 = vmatpush1.bf16.msra.mxu1 %v3851_v30  ;;  %v360_v30 = vld [vmem:[%s6020_s1 + $0xa70] sm:$0xff]  ;;  %v189_v22 = vld [vmem:[%s6020_s1 + $0x518] sm:$0xff] }
 0x12a   :  { %2950 = vmatprep.subr.bf16.mxu1 %v3844_v35  ;;  %v121_v35 = vld [vmem:[%s6020_s1 + $0x2f8] sm:$0xff]  ;;  %v4154_v38 = vcombine.high %v356_v29, %v360_v30  ;;  %v4153_v45 = vcombine.low %v356_v29, %v360_v30 }
 0x12b   :  { %2873 = vmatpush1.bf16.msra.mxu0 %v4081_v39  ;;  %v3916_v21 = vcombine.high %v117_v33, %v121_v35  ;;  %v348_v39 = vld [vmem:[%s6020_s1 + $0xa10] sm:$0xff]  ;;  %v3915_v46 = vcombine.low %v117_v33, %v121_v35  ;;  %v193_v24 = vld [vmem:[%s6020_s1 + $0x538] sm:$0xff] }
 0x12c   :  { %2874 = vmatprep.subr.bf16.mxu0 %v4202_v41  ;;  %v109_v41 = vld [vmem:[%s6020_s1 + $0x298] sm:$0xff]  ;;  %v3988_v29 = vcombine.high %v189_v22, %v193_v24 }
 0x12d   :  { %2951 = vmatpush1.bf16.msra.mxu1 %v3843_v40  ;;  %v352_v40 = vld [vmem:[%s6020_s1 + $0xa30] sm:$0xff]  ;;  %v181_v35 = vld [vmem:[%s6020_s1 + $0x4d8] sm:$0xff] }
 0x12e   :  { %2952 = vmatprep.subr.bf16.mxu1 %v3836_v42  ;;  %v113_v42 = vld [vmem:[%s6020_s1 + $0x2b8] sm:$0xff]  ;;  %v4146_v48 = vcombine.high %v348_v39, %v352_v40  ;;  %v4145_v61 = vcombine.low %v348_v39, %v352_v40 }
 0x12f   :  { %2875 = vmatpush2.bf16.msra.mxu0 %v4201_v50  ;;  %v3908_v49 = vcombine.high %v109_v41, %v113_v42  ;;  %v213_v50 = vld [vmem:[%s6020_s1 + $0x5d8] sm:$0xff] }
 0x130   :  { %2876 = vmatprep.subr.bf16.mxu0 %v4194_v52 }
 0x131   :  { %2953 = vmatpush1.bf16.msra.mxu1 %v3835_v51  ;;  %v217_v51 = vld [vmem:[%s6020_s1 + $0x5f8] sm:$0xff] }
 0x132   :  { %2954 = vmatprep.subr.bf16.mxu1 %v3828_v55  ;;  %v101_v55 = vld [vmem:[%s6020_s1 + $0x258] sm:$0xff] }
 0x133   :  { %2877 = vmatpush2.bf16.msra.mxu0 %v4193_v63  ;;  %v3907_v63 = vcombine.low %v109_v41, %v113_v42  ;;  %v3900_v3 = vcombine.high %v101_v55, %v105_v56  ;;  %v173_v42 = vld [vmem:[%s6020_s1 + $0x498] sm:$0xff] }
 0x134   :  { %2878 = vmatprep.subr.bf16.mxu0 %v4186_v1 }
 0x135   :  { %2955 = vmatpush1.bf16.msra.mxu1 %v3827_v0  ;;  %v4012_v0 = vcombine.high %v213_v50, %v217_v51 }
 0x136   :  { %2956 = vmatprep.subr.bf16.mxu1 %v3948_v2 }
 0x137   :  { %2879 = vmatpush2.bf16.msra.mxu0 %v4185_v8  ;;  %v4011_v8 = vcombine.low %v213_v50, %v217_v51 }
 0x138   :  { %2880 = vmatprep.subr.bf16.mxu0 %v4178_v4  ;;  %v3899_v4 = vcombine.low %v101_v55, %v105_v56  ;;  %v309_v55 = vld [vmem:[%s6020_s1 + $0x8d8] sm:$0xff] }
 0x139   :  { %2957 = vmatpush2.bf16.msra.mxu1 %v3947_v9  ;;  %v313_v56 = vld [vmem:[%s6020_s1 + $0x8f8] sm:$0xff] }
 0x13a   :  { %2958 = vmatprep.subr.bf16.mxu1 %v3940_v10 }
 0x13b   :  { %2881 = vmatpush2.bf16.msra.mxu0 %v4177_v58 }
 0x13c   :  { %2882 = vmatprep.subr.bf16.mxu0 %v4170_v17 }
 0x13d   :  { %2959 = vmatpush2.bf16.msra.mxu1 %v3939_v15 }
 0x13e   :  { %2960 = vmatprep.subr.bf16.mxu1 %v3932_v18  ;;  %v3996_v18 = vcombine.high %v197_v12, %v201_v13 }
 0x13f   :  { %2883 = vmatpush2.bf16.msra.mxu0 %v4169_v54  ;;  %v337_v54 = vld [vmem:[%s6020_s1 + $0x9b8] sm:$0xff] }
 0x140   :  { %2884 = vmatprep.subr.bf16.mxu0 %v4162_v27  ;;  %v3995_v27 = vcombine.low %v197_v12, %v201_v13 }
 0x141   :  { %2961 = vmatpush2.bf16.msra.mxu1 %v3931_v26 }
 0x142   :  { %2962 = vmatprep.subr.bf16.mxu1 %v3924_v28 }
 0x143   :  { %2885 = vmatpush2.bf16.msra.mxu0 %v4161_v36  ;;  %v185_v36 = vld [vmem:[%s6020_s1 + $0x4f8] sm:$0xff] }
 0x144   :  { %2886 = vmatprep.subr.bf16.mxu0 %v4154_v38  ;;  %v329_v38 = vld [vmem:[%s6020_s1 + $0x978] sm:$0xff]  ;;  %v3980_v40 = vcombine.high %v181_v35, %v185_v36 }
 0x145   :  { %2963 = vmatpush2.bf16.msra.mxu1 %v3923_v37  ;;  %v325_v37 = vld [vmem:[%s6020_s1 + $0x958] sm:$0xff] }
 0x146   :  { %2964 = vmatprep.subr.bf16.mxu1 %v3916_v21  ;;  %v2564_v52 = vpop.f32.mrf.mxu0  ;;  %v3987_v21 = vcombine.low %v189_v22, %v193_v24  ;;  %v4124_v41 = vcombine.high %v325_v37, %v329_v38 }
 0x147   :  { %v2565_v57 = vadd.f32 %v2564_v52, %v5369_v23  ;;  %2887 = vmatpush2.bf16.msra.mxu0 %v4153_v45  ;;  %v209_v23 = vld [vmem:[%s6020_s1 + $0x5b8] sm:$0xff] }
 0x148   :  { %v2566_v62 = vpop.f32.mrf.mxu0  ;;  %2888 = vmatprep.subr.bf16.mxu0 %v4146_v48  ;;  %v4004_v10 = vcombine.high %v205_v5, %v209_v23  ;;  %v4003_v15 = vcombine.low %v205_v5, %v209_v23  ;;  %v177_v45 = vld [vmem:[%s6020_s1 + $0x4b8] sm:$0xff]  ;;  %v3979_v48 = vcombine.low %v181_v35, %v185_v36 }
 0x149   :  { %2965 = vmatpush2.bf16.msra.mxu1 %v3915_v46  ;;  %v5572_v1 = vadd.f32 %v5393_v43, %v2565_v57  ;;  %v2567_v2 = vadd.f32 %v2566_v62, %v5383_v34  ;;  %v97_v43 = vld [vmem:[%s6020_s1 + $0x238] sm:$0xff]  ;;  %v3972_v50 = vcombine.high %v173_v42, %v177_v45  ;;  %v3971_v57 = vcombine.low %v173_v42, %v177_v45 }
 0x14a   :  { %2966 = vmatprep.subr.bf16.mxu1 %v3908_v49  ;;  %v2568_v6 = vpop.f32.mrf.mxu0  ;;  %v3892_v11 = vcombine.high %v93_v7, %v97_v43  ;;  %v3891_v17 = vcombine.low %v93_v7, %v97_v43  ;;  %v321_v46 = vld [vmem:[%s6020_s1 + $0x938] sm:$0xff]  ;;  %v4123_v49 = vcombine.low %v325_v37, %v329_v38 }
 0x14b   :  { %v5588_v34 = vadd.f32 %v5395_v47, %v2567_v2  ;;  %2889 = vmatpush2.bf16.msra.mxu0 %v4145_v61  ;;  %v341_v47 = vld [vmem:[%s6020_s1 + $0x9d8] sm:$0xff]  ;;  %v4107_v6 = vcombine.low %v309_v55, %v313_v56 }
 0x14c   :  { %v2569_v9 = vpop.f32.mrf.mxu0  ;;  %2981 = vmatprep.subr.bf16.mxu0 %v4012_v0  ;;  %v4140_v53 = vcombine.high %v341_v47, %v345_v14  ;;  %v4139_v28 = vcombine.low %v341_v47, %v345_v14  ;;  %v169_v52 = vld [vmem:[%s6020_s1 + $0x478] sm:$0xff] }
 0x14d   :  { %2967 = vmatpush2.bf16.msra.mxu1 %v3907_v63  ;;  %v4108_v63 = vcombine.high %v309_v55, %v313_v56  ;;  %v157_v0 = vld [vmem:[%s6020_s1 + $0x418] sm:$0xff] }
 0x14e   :  { %2968 = vmatprep.subr.bf16.mxu1 %v3900_v3  ;;  %2891 = vmatmul.mubr.bf16.vlgmr.msra.gmra.mxu0 %v4950_v32  ;;  %v161_v2 = vld [vmem:[%s6020_s1 + $0x438] sm:$0xff] }
 0x14f   :  { %2982 = vmatpush1.bf16.msra.mxu0 %v4011_v8  ;;  %3013 = vmatprep.mubr.bf16.mxu0 %v4606_v59  ;;  %v333_v59 = vld [vmem:[%s6020_s1 + $0x998] sm:$0xff]  ;;  %v3956_v7 = vcombine.high %v157_v0, %v161_v2 }
 0x150   :  { %v5603_v58 = vpop.f32.mrf.mxu1  ;;  %2983 = vmatprep.subr.bf16.mxu0 %v4004_v10  ;;  %v4132_v33 = vcombine.high %v333_v59, %v337_v54  ;;  %v4131_v39 = vcombine.low %v333_v59, %v337_v54  ;;  %v301_v3 = vld [vmem:[%s6020_s1 + $0x898] sm:$0xff] }
 0x151   :  { %2969 = vmatpush2.bf16.msra.mxu1 %v3899_v4  ;;  %v305_v5 = vld [vmem:[%s6020_s1 + $0x8b8] sm:$0xff] }
 0x152   :  { %v5606_v20 = vpop.f32.mrf.mxu1  ;;  %2970 = vmatprep.subr.bf16.mxu1 %v3892_v11  ;;  %v4100_v43 = vcombine.high %v301_v3, %v305_v5  ;;  %v277_v8 = vld [vmem:[%s6020_s1 + $0x7d8] sm:$0xff]  ;;  %v3955_v11 = vcombine.low %v157_v0, %v161_v2  ;;  %v4099_v12 = vcombine.low %v301_v3, %v305_v5 }
 0x153   :  { %2984 = vmatpush1.bf16.msra.mxu0 %v4003_v15  ;;  %v281_v9 = vld [vmem:[%s6020_s1 + $0x7f8] sm:$0xff] }
 0x154   :  { %v2650_v26 = vpop.f32.mrf.mxu1  ;;  %2985 = vmatprep.subr.bf16.mxu0 %v3996_v18  ;;  %v293_v4 = vld [vmem:[%s6020_s1 + $0x858] sm:$0xff]  ;;  %v4076_v13 = vcombine.high %v277_v8, %v281_v9 }
 0x155   :  { %2971 = vmatpush2.bf16.msra.mxu1 %v3891_v17  ;;  %v297_v10 = vld [vmem:[%s6020_s1 + $0x878] sm:$0xff] }
 0x156   :  { %v2651_v30 = vpop.f32.mrf.mxu1  ;;  %3022 = vmatprep.subr.bf16.mxu1 %v4140_v53  ;;  %v4092_v47 = vcombine.high %v293_v4, %v297_v10  ;;  %v269_v14 = vld [vmem:[%s6020_s1 + $0x798] sm:$0xff]  ;;  %v4075_v53 = vcombine.low %v277_v8, %v281_v9  ;;  %v4091_v22 = vcombine.low %v293_v4, %v297_v10 }
 0x157   :  { %2986 = vmatpush1.bf16.msra.mxu0 %v3995_v27  ;;  %v273_v15 = vld [vmem:[%s6020_s1 + $0x7b8] sm:$0xff] }
 0x158   :  { %2973 = vmatmul.mubr.bf16.vlgmr.msra.gmra.mxu1 %v4732_v16  ;;  %2987 = vmatprep.subr.bf16.mxu0 %v3988_v29  ;;  %v317_v16 = vld [vmem:[%s6020_s1 + $0x918] sm:$0xff]  ;;  %v4068_v24 = vcombine.high %v269_v14, %v273_v15  ;;  %v4067_v29 = vcombine.low %v269_v14, %v273_v15 }
 0x159   :  { %3023 = vmatpush1.bf16.msra.mxu1 %v4139_v28  ;;  %3054 = vmatprep.mubr.bf16.mxu1 %v4758_v25  ;;  %v4116_v51 = vcombine.high %v317_v16, %v321_v46  ;;  %v165_v25 = vld [vmem:[%s6020_s1 + $0x458] sm:$0xff]  ;;  %v4115_v61 = vcombine.low %v317_v16, %v321_v46 }
 0x15a   :  { %3024 = vmatprep.subr.bf16.mxu1 %v4132_v33  ;;  %v3964_v62 = vcombine.high %v165_v25, %v169_v52  ;;  %v3963_v23 = vcombine.low %v165_v25, %v169_v52  ;;  %v285_v17 = vld [vmem:[%s6020_s1 + $0x818] sm:$0xff] }
 0x15b   :  { %2988 = vmatpush1.bf16.msra.mxu0 %v3987_v21  ;;  %v289_v18 = vld [vmem:[%s6020_s1 + $0x838] sm:$0xff] }
 0x15c   :  { %2989 = vmatprep.subr.bf16.mxu0 %v3980_v40  ;;  %v4084_v59 = vcombine.high %v285_v17, %v289_v18  ;;  %v261_v54 = vld [vmem:[%s6020_s1 + $0x758] sm:$0xff]  ;;  %v4083_v30 = vcombine.low %v285_v17, %v289_v18  ;;  %v434_v18 = vsub.s32 3, %v5322_v44 }
 0x15d   :  { %3025 = vmatpush1.bf16.msra.mxu1 %v4131_v39  ;;  %v265_v26 = vld [vmem:[%s6020_s1 + $0x778] sm:$0xff] }
 0x15e   :  { %3026 = vmatprep.subr.bf16.mxu1 %v4124_v41  ;;  %v405_v27 = vld [vmem:[%s6020_s1 + $0xbd8] sm:$0xff]  ;;  %v4060_v33 = vcombine.high %v261_v54, %v265_v26  ;;  %v4059_v39 = vcombine.low %v261_v54, %v265_v26 }
 0x15f   :  { %2990 = vmatpush1.bf16.msra.mxu0 %v3979_v48  ;;  %v409_v28 = vld [vmem:[%s6020_s1 + $0xbf8] sm:$0xff] }
 0x160   :  { %2991 = vmatprep.subr.bf16.mxu0 %v3972_v50  ;;  %v4204_v35 = vcombine.high %v405_v27, %v409_v28  ;;  %v253_v36 = vld [vmem:[%s6020_s1 + $0x718] sm:$0xff]  ;;  %v4203_v40 = vcombine.low %v405_v27, %v409_v28 }
 0x161   :  { %3027 = vmatpush1.bf16.msra.mxu1 %v4123_v49  ;;  %v257_v37 = vld [vmem:[%s6020_s1 + $0x738] sm:$0xff] }
 0x162   :  { %3028 = vmatprep.subr.bf16.mxu1 %v4116_v51  ;;  %v397_v38 = vld [vmem:[%s6020_s1 + $0xb98] sm:$0xff]  ;;  %v4052_v41 = vcombine.high %v253_v36, %v257_v37  ;;  %v4051_v49 = vcombine.low %v253_v36, %v257_v37 }
 0x163   :  { %2992 = vmatpush1.bf16.msra.mxu0 %v3971_v57  ;;  %v401_v21 = vld [vmem:[%s6020_s1 + $0xbb8] sm:$0xff] }
 0x164   :  { %2993 = vmatprep.subr.bf16.mxu0 %v3964_v62  ;;  %v4196_v42 = vcombine.high %v397_v38, %v401_v21  ;;  %v245_v45 = vld [vmem:[%s6020_s1 + $0x6d8] sm:$0xff]  ;;  %v4195_v50 = vcombine.low %v397_v38, %v401_v21 }
 0x165   :  { %3029 = vmatpush1.bf16.msra.mxu1 %v4115_v61  ;;  %v249_v16 = vld [vmem:[%s6020_s1 + $0x6f8] sm:$0xff] }
 0x166   :  { %3030 = vmatprep.subr.bf16.mxu1 %v4108_v63  ;;  %v389_v46 = vld [vmem:[%s6020_s1 + $0xb58] sm:$0xff]  ;;  %v4044_v51 = vcombine.high %v245_v45, %v249_v16  ;;  %v4043_v61 = vcombine.low %v245_v45, %v249_v16 }
 0x167   :  { %2994 = vmatpush1.bf16.msra.mxu0 %v3963_v23  ;;  %v393_v48 = vld [vmem:[%s6020_s1 + $0xb78] sm:$0xff] }
 0x168   :  { %2995 = vmatprep.subr.bf16.mxu0 %v3956_v7  ;;  %v4188_v25 = vcombine.high %v389_v46, %v393_v48  ;;  %v237_v52 = vld [vmem:[%s6020_s1 + $0x698] sm:$0xff]  ;;  %v4187_v62 = vcombine.low %v389_v46, %v393_v48 }
 0x169   :  { %3031 = vmatpush1.bf16.msra.mxu1 %v4107_v6  ;;  %v241_v55 = vld [vmem:[%s6020_s1 + $0x6b8] sm:$0xff] }
 0x16a   :  { %3032 = vmatprep.subr.bf16.mxu1 %v4100_v43  ;;  %v381_v56 = vld [vmem:[%s6020_s1 + $0xb18] sm:$0xff]  ;;  %v4036_v63 = vcombine.high %v237_v52, %v241_v55  ;;  %v4035_v6 = vcombine.low %v237_v52, %v241_v55 }
 0x16b   :  { %2996 = vmatpush1.bf16.msra.mxu0 %v3955_v11  ;;  %v385_v57 = vld [vmem:[%s6020_s1 + $0xb38] sm:$0xff] }
 0x16c   :  { %2997 = vmatprep.subr.bf16.mxu0 %v4076_v13  ;;  %v4180_v0 = vcombine.high %v381_v56, %v385_v57  ;;  %v229_v2 = vld [vmem:[%s6020_s1 + $0x658] sm:$0xff]  ;;  %v4179_v7 = vcombine.low %v381_v56, %v385_v57  ;;  %v4384_v56 = vld [vmem:[%s6022_s3 + $0xf0] sm:$0xff]  }
 0x16d   :  { %3033 = vmatpush1.bf16.msra.mxu1 %v4099_v12  ;;  %v233_v3 = vld [vmem:[%s6020_s1 + $0x678] sm:$0xff] }
 0x16e   :  { %3034 = vmatprep.subr.bf16.mxu1 %v4092_v47  ;;  %v373_v5 = vld [vmem:[%s6020_s1 + $0xad8] sm:$0xff]  ;;  %v4028_v43 = vcombine.high %v229_v2, %v233_v3  ;;  %v4027_v12 = vcombine.low %v229_v2, %v233_v3  ;;  %v4386_v2 = vld [vmem:[%s6022_s3 + $0xb0] sm:$0xff]   ;;  %v4387_v3 = vld [vmem:[%s6022_s3 + $0x68] sm:$0xff]  }
 0x16f   :  { %2998 = vmatpush2.bf16.msra.mxu0 %v4075_v53  ;;  %v377_v23 = vld [vmem:[%s6020_s1 + $0xaf8] sm:$0xff] }
 0x170   :  { %2999 = vmatprep.subr.bf16.mxu0 %v4068_v24  ;;  %v4172_v8 = vcombine.high %v373_v5, %v377_v23  ;;  %v221_v9 = vld [vmem:[%s6020_s1 + $0x618] sm:$0xff]  ;;  %v4171_v13 = vcombine.low %v373_v5, %v377_v23  ;;  %v4389_v5 = vld [vmem:[%s6022_s3 + $0x28] sm:$0xff]  }
 0x171   :  { %3035 = vmatpush1.bf16.msra.mxu1 %v4091_v22  ;;  %v225_v4 = vld [vmem:[%s6020_s1 + $0x638] sm:$0xff]  ;;  %v4390_v23 = vld [vmem:[%s6022_s3 + $0xa8] sm:$0xff]  }
 0x172   :  { %3036 = vmatprep.subr.bf16.mxu1 %v4084_v59  ;;  %v365_v10 = vld [vmem:[%s6020_s1 + $0xa98] sm:$0xff]  ;;  %v4020_v47 = vcombine.high %v221_v9, %v225_v4  ;;  %v4019_v59 = vcombine.low %v221_v9, %v225_v4  ;;  %v4394_v9 = vld [vmem:[%s6022_s3 + $0xa0] sm:$0xff]  }
 0x173   :  { %3000 = vmatpush2.bf16.msra.mxu0 %v4067_v29  ;;  %v369_v11 = vld [vmem:[%s6020_s1 + $0xab8] sm:$0xff]  ;;  %v435_v29 = vrot.slane %v5340_v60, %v434_v18 }
 0x174   :  { %3001 = vmatprep.subr.bf16.mxu0 %v4060_v33  ;;  %v4164_v14 = vcombine.high %v365_v10, %v369_v11  ;;  %v413_v15 = vld [vmem:[%s6020_s1 + $0xc18] sm:$0xff]  ;;  %v4163_v26 = vcombine.low %v365_v10, %v369_v11  ;;  %v5856_v10 = vld [vmem:[%s6021_s2] sm:$0xff] }
 0x175   :  { %3037 = vmatpush1.bf16.msra.mxu1 %v4083_v30  ;;  %v417_v17 = vld [vmem:[%s6020_s1 + $0xc38] sm:$0xff] }
 0x176   :  { %3038 = vmatprep.subr.bf16.mxu1 %v4204_v35  ;;  %v357_v22 = vld [vmem:[%s6020_s1 + $0xa58] sm:$0xff]  ;;  %v4212_v27 = vcombine.high %v413_v15, %v417_v17  ;;  %v4211_v36 = vcombine.low %v413_v15, %v417_v17  ;;  %v4400_v17 = vld [vmem:[%s6022_s3 + $0xd0] sm:$0xff]  }
 0x177   :  { %3002 = vmatpush2.bf16.msra.mxu0 %v4059_v39  ;;  %v361_v24 = vld [vmem:[%s6020_s1 + $0xa78] sm:$0xff]  ;;  %v2649_v39 = vadd.f32 %v5606_v20, %v435_v29  ;;  %v4408_v29 = vld [vmem:[%s6022_s3 + $0xc0] sm:$0xff]  }
 0x178   :  { %3003 = vmatprep.subr.bf16.mxu0 %v4052_v41  ;;  %v4156_v28 = vcombine.high %v357_v22, %v361_v24  ;;  %v349_v33 = vld [vmem:[%s6020_s1 + $0xa18] sm:$0xff]  ;;  %v4155_v38 = vcombine.low %v357_v22, %v361_v24  ;;  %v4401_v22 = vld [vmem:[%s6022_s3 + $0x10] sm:$0xff]  }
 0x179   :  { %3039 = vmatpush2.bf16.msra.mxu1 %v4203_v40  ;;  %v353_v35 = vld [vmem:[%s6020_s1 + $0xa38] sm:$0xff]  ;;  %v4402_v24 = vld [vmem:[%s6022_s3 + $0x90] sm:$0xff]  }
 0x17a   :  { %3040 = vmatprep.subr.bf16.mxu1 %v4196_v42  ;;  %v4379_v21 = vld [vmem:[%s6022_s3 + $0x78] sm:$0xff]   ;;  %v4148_v60 = vcombine.high %v349_v33, %v353_v35  ;;  %v4147_v16 = vcombine.low %v349_v33, %v353_v35  ;;  %v3104_v33 = vmax.f32 %v5572_v1, 0.0  ;;  %v4410_v35 = vld [vmem:[%s6022_s3 + $0x80] sm:$0xff]  }
 0x17b   :  { %3004 = vmatpush2.bf16.msra.mxu0 %v4051_v49  ;;  %v4380_v20 = vld [vmem:[%s6022_s3 + $0xf8] sm:$0xff]  }
 0x17c   :  { %3005 = vmatprep.subr.bf16.mxu0 %v4044_v51  ;;  %v4382_v52 = vld [vmem:[%s6022_s3 + $0xb8] sm:$0xff]  }
 0x17d   :  { %3041 = vmatpush2.bf16.msra.mxu1 %v4195_v50  ;;  %v4395_v4 = vld [vmem:[%s6022_s3 + $0x58] sm:$0xff]  }
 0x17e   :  { %3042 = vmatprep.subr.bf16.mxu1 %v4188_v25  ;;  %v4412_v1 = vld [vmem:[%s6022_s3 + $0x138] sm:$0xff]  }
 0x17f   :  { %3006 = vmatpush2.bf16.msra.mxu0 %v4043_v61 }
 0x180   :  { %3007 = vmatprep.subr.bf16.mxu0 %v4036_v63  ;;  %v4385_v63 = vld [vmem:[%s6022_s3 + $0x30] sm:$0xff]  }
 0x181   :  { %3043 = vmatpush2.bf16.msra.mxu1 %v4187_v62  ;;  %v4444_v62 = vld [vmem:[%s6019_s0 + $0x18] ss:$0 sps:$4 sm:$0xff]  }
 0x182   :  { %3044 = vmatprep.subr.bf16.mxu1 %v4180_v0 }
 0x183   :  { %3008 = vmatpush2.bf16.msra.mxu0 %v4035_v6  ;;  %v4391_v6 = vld [vmem:[%s6022_s3 + $0x60] sm:$0xff]  }
 0x184   :  { %3009 = vmatprep.subr.bf16.mxu0 %v4028_v43  ;;  %v4392_v43 = vld [vmem:[%s6022_s3 + $0xe0] sm:$0xff]  }
 0x185   :  { %3045 = vmatpush2.bf16.msra.mxu1 %v4179_v7  ;;  %v430_v7 = vsub.s32 2, %v5322_v44 }
 0x186   :  { %3046 = vmatprep.subr.bf16.mxu1 %v4172_v8  ;;  %v5773_v53 = vpop.f32.mrf.mxu0  ;;  %v4393_v8 = vld [vmem:[%s6022_s3 + $0x20] sm:$0xff]  }
 0x187   :  { %3010 = vmatpush2.bf16.msra.mxu0 %v4027_v12  ;;  %v431_v11 = vrot.slane %v5856_v10, %v430_v7  ;;  %v4396_v12 = vld [vmem:[%s6022_s3 + $0xd8] sm:$0xff]  }
 0x188   :  { %v2689_v54 = vpop.f32.mrf.mxu0  ;;  %3011 = vmatprep.subr.bf16.mxu0 %v4020_v47  ;;  %v4398_v47 = vld [vmem:[%s6022_s3 + $0x98] sm:$0xff]  }
 0x189   :  { %3047 = vmatpush2.bf16.msra.mxu1 %v4171_v13  ;;  %v2690_v42 = vadd.f32 %v2689_v54, %v2649_v39  ;;  %v4397_v13 = vld [vmem:[%s6022_s3 + $0x18] sm:$0xff]   ;;  %v2647_v15 = vadd.f32 %v5603_v58, %v431_v11  ;;  %v4403_v58 = vld [vmem:[%s6022_s3 + $0x48] sm:$0xff]  }
 0x18a   :  { %3048 = vmatprep.subr.bf16.mxu1 %v4164_v14  ;;  %v2691_v30 = vpop.f32.mrf.mxu0  ;;  %v4399_v14 = vld [vmem:[%s6022_s3 + $0x50] sm:$0xff]   ;;  %v4405_v54 = vld [vmem:[%s6022_s3 + $0x8] sm:$0xff]   ;;  %v4428_v39 = vld [vmem:[%s6022_s3 + $0x1b8] sm:$0xff]  }
 0x18b   :  { %3012 = vmatpush2.bf16.msra.mxu0 %v4019_v59  ;;  %v2688_v18 = vadd.f32 %v5773_v53, %v2647_v15  ;;  %v4404_v53 = vld [vmem:[%s6022_s3 + $0xc8] sm:$0xff]   ;;  %v4409_v30 = vld [vmem:[%s6022_s3] sm:$0xff]  }
 0x18c   :  { %v2692_v37 = vpop.f32.mrf.mxu0  ;;  %3077 = vmatprep.subr.bf16.mxu0 %v4212_v27  ;;  %v4407_v27 = vld [vmem:[%s6022_s3 + $0x40] sm:$0xff]   ;;  %v4439_v11 = vld [vmem:[%s6022_s3 + $0x1c8] sm:$0xff]  }
 0x18d   :  { %3049 = vmatpush2.bf16.msra.mxu1 %v4163_v26  ;;  %v4406_v26 = vld [vmem:[%s6022_s3 + $0x88] sm:$0xff]   ;;  %v4442_v15 = vld [vmem:[%s6022_s3 + $0x180] sm:$0xff]  }
 0x18e   :  { %3050 = vmatprep.subr.bf16.mxu1 %v4156_v28  ;;  %3014 = vmatmul.mubr.bf16.vlgmr.msra.gmra.mxu0 %v4742_v19  ;;  %v5793_v40 = vpop.f32.mrf.mxu0  ;;  %v3105_v19 = vmax.f32 %v5588_v34, 0.0  ;;  %v4383_v34 = vld [vmem:[%s6022_s3 + $0x70] sm:$0xff]  }
 0x18f   :  { %3078 = vmatpush1.bf16.msra.mxu0 %v4211_v36  ;;  %3095 = vmatprep.mubr.bf16.mxu0 %v4468_v31  ;;  %v4381_v31 = vld [vmem:[%s6022_s3 + $0x38] sm:$0xff]  }
 0x190   :  { %v5795_v41 = vpop.f32.mrf.mxu1  ;;  %v2771_v45 = vpop.f32.mrf.mxu0  ;;  %4282 = vmatprep.subr.bf16.mxu0 %v4379_v21  ;;  %v3113_v57 = vpack.c.bf16 %v3105_v19, %v3105_v19  ;;  %v4411_v36 = vld [vmem:[%s6022_s3 + $0x178] sm:$0xff]   ;;  %v3112_v21 = vpack.c.bf16 %v3104_v33, %v3104_v33  ;;  %v4417_v19 = vld [vmem:[%s6022_s3 + $0x160] sm:$0xff]  }
 0x191   :  { %3051 = vmatpush2.bf16.msra.mxu1 %v4155_v38  ;;  %v2729_v59 = vadd.f32 %v5795_v41, %v2688_v18  ;;  %v4427_v38 = vld [vmem:[%s6022_s3 + $0x1f8] sm:$0xff]   ;;  %v4429_v41 = vld [vmem:[%s6022_s3 + $0x1f0] sm:$0xff]   ;;  %v442_v18 = vsub.s32 5, %v5322_v44 }
 0x192   :  { %v2730_v46 = vpop.f32.mrf.mxu1  ;;  %3052 = vmatprep.subr.bf16.mxu1 %v4148_v60  ;;  %v2773_v49 = vpop.f32.mrf.mxu0  ;;  %v4413_v60 = vld [vmem:[%s6022_s3 + $0x170] sm:$0xff]  }
 0x193   :  { %v2731_v48 = vadd.f32 %v2730_v46, %v2690_v42  ;;  %v2770_v28 = vadd.f32 %v5793_v40, %v2729_v59  ;;  %v4414_v42 = vld [vmem:[%s6022_s3 + $0x130] sm:$0xff]   ;;  %v4431_v46 = vld [vmem:[%s6022_s3 + $0x1e8] sm:$0xff]   ;;  %v4433_v49 = vld [vmem:[%s6022_s3 + $0x1e0] sm:$0xff]  }
 0x194   :  { %v2732_v50 = vpop.f32.mrf.mxu1  ;;  %v2774_v25 = vpop.f32.mrf.mxu0 }
 0x195   :  { %v2772_v51 = vadd.f32 %v2771_v45, %v2731_v48  ;;  %3053 = vmatpush2.bf16.msra.mxu1 %v4147_v16  ;;  %v3106_v37 = vmax.f32 %v2770_v28, 0.0  ;;  %v4415_v45 = vld [vmem:[%s6022_s3 + $0x168] sm:$0xff]   ;;  %v4430_v16 = vld [vmem:[%s6022_s3 + $0x1b0] sm:$0xff]   ;;  %v4418_v50 = vld [vmem:[%s6022_s3 + $0x120] sm:$0xff]  }
 0x196   :  { %v2733_v55 = vpop.f32.mrf.mxu1  ;;  %4304 = vmatprep.subr.bf16.mxu1 %v4380_v20  ;;  %4216 = vmatmul.mubr.msk.bf16.vlgmr.msra.gmra.mxu0 %vm2444_vm0, %v4444_v62  ;;  %v4416_v20 = vld [vmem:[%s6022_s3 + $0x128] sm:$0xff]   ;;  %v4421_v25 = vld [vmem:[%s6022_s3 + $0x150] sm:$0xff]  }
 0x197   :  { %v3107_v61 = vmax.f32 %v2772_v51, 0.0  ;;  %4283 = vmatpush3.bf16.msra.mxu0 %v4381_v31  ;;  %3671 = vmatprep.mubr.bf16.mxu0 %v3113_v57  ;;  %v3114_v40 = vpack.c.bf16 %v3106_v37, %v3106_v37  ;;  %v4432_v48 = vld [vmem:[%s6022_s3 + $0x1a8] sm:$0xff]   ;;  %v4419_v31 = vld [vmem:[%s6022_s3 + $0x158] sm:$0xff]  }
 0x198   :  { %3055 = vmatmul.mubr.bf16.vlgmr.msra.gmra.mxu1 %v4950_v32  ;;  %4284 = vmatprep.subr.bf16.mxu0 %v4383_v34  ;;  %v4388_v32 = vld [vmem:[%s6022_s3 + $0xe8] sm:$0xff]   ;;  %v4420_v51 = vld [vmem:[%s6022_s3 + $0x118] sm:$0xff]  }
 0x199   :  { %v3115_v0 = vpack.c.bf16 %v3107_v61, %v3107_v61  ;;  %4305 = vmatpush3.bf16.msra.mxu1 %v4382_v52  ;;  %v4422_v52 = vld [vmem:[%s6022_s3 + $0x110] sm:$0xff]   ;;  %v4423_v55 = vld [vmem:[%s6022_s3 + $0x148] sm:$0xff]   ;;  %v4434_v61 = vld [vmem:[%s6022_s3 + $0x1a0] sm:$0xff]  }
 0x19a   :  { %4306 = vmatprep.subr.bf16.mxu1 %v4384_v56  ;;  %v4424_v34 = vld [vmem:[%s6022_s3 + $0x108] sm:$0xff]   ;;  %v4425_v56 = vld [vmem:[%s6022_s3 + $0x140] sm:$0xff]  }
 0x19b   :  { %3711 = vmatprep.mubr.bf16.mxu1 %v3115_v0  ;;  %4285 = vmatpush3.bf16.msra.mxu0 %v4385_v63  ;;  %v4426_v63 = vld [vmem:[%s6022_s3 + $0x100] sm:$0xff]  }
 0x19c   :  { %4286 = vmatprep.subr.bf16.mxu0 %v4387_v3  ;;  %v4435_v3 = vld [vmem:[%s6022_s3 + $0x1d8] sm:$0xff]  }
 0x19d   :  { %4307 = vmatpush3.bf16.msra.mxu1 %v4386_v2 }
 0x19e   :  { %4308 = vmatprep.subr.bf16.mxu1 %v4388_v32 }
 0x19f   :  { %4287 = vmatpush3.bf16.msra.mxu0 %v4389_v5  ;;  %v4436_v5 = vld [vmem:[%s6022_s3 + $0x198] sm:$0xff]  }
 0x1a0   :  { %4288 = vmatprep.subr.bf16.mxu0 %v4391_v6 }
 0x1a1   :  { %4309 = vmatpush3.bf16.msra.mxu1 %v4390_v23 }
 0x1a2   :  { %4310 = vmatprep.subr.bf16.mxu1 %v4392_v43  ;;  %v4437_v43 = vld [vmem:[%s6022_s3 + $0x1d0] sm:$0xff]  }
 0x1a3   :  { %4289 = vmatpush3.bf16.msra.mxu0 %v4393_v8  ;;  %v4438_v8 = vld [vmem:[%s6022_s3 + $0x190] sm:$0xff]  }
 0x1a4   :  { %4290 = vmatprep.subr.bf16.mxu0 %v4395_v4 }
 0x1a5   :  { %4311 = vmatpush3.bf16.msra.mxu1 %v4394_v9 }
 0x1a6   :  { %4312 = vmatprep.subr.bf16.mxu1 %v4396_v12  ;;  %v4440_v12 = vld [vmem:[%s6022_s3 + $0x188] sm:$0xff]  }
 0x1a7   :  { %4291 = vmatpush3.bf16.msra.mxu0 %v4397_v13 }
 0x1a8   :  { %4292 = vmatprep.subr.bf16.mxu0 %v4399_v14  ;;  %v4441_v14 = vld [vmem:[%s6022_s3 + $0x1c0] sm:$0xff]  }
 0x1a9   :  { %4313 = vmatpush3.bf16.msra.mxu1 %v4398_v47 }
 0x1aa   :  { %4314 = vmatprep.subr.bf16.mxu1 %v4400_v17  ;;  %v438_v17 = vsub.s32 4, %v5322_v44 }
 0x1ab   :  { %4293 = vmatpush3.bf16.msra.mxu0 %v4401_v22 }
 0x1ac   :  { %4294 = vmatprep.subr.bf16.mxu0 %v4403_v58  ;;  %v439_v22 = vrot.slane %v5856_v10, %v438_v17 }
 0x1ad   :  { %4315 = vmatpush3.bf16.msra.mxu1 %v4402_v24  ;;  %v443_v24 = vrot.slane %v5856_v10, %v442_v18 }
 0x1ae   :  { %4316 = vmatprep.subr.bf16.mxu1 %v4404_v53 }
 0x1af   :  { %4295 = vmatpush3.bf16.msra.mxu0 %v4405_v54 }
 0x1b0   :  { %4296 = vmatprep.subr.bf16.mxu0 %v4407_v27 }
 0x1b1   :  { %4317 = vmatpush3.bf16.msra.mxu1 %v4406_v26 }
 0x1b2   :  { %4318 = vmatprep.subr.bf16.mxu1 %v4408_v29 }
 0x1b3   :  { %4297 = vmatpush3.bf16.msra.mxu0 %v4409_v30 }
 0x1b4   :  { %4326 = vmatprep.subr.bf16.mxu0 %v4411_v36 }
 0x1b5   :  { %4319 = vmatpush3.bf16.msra.mxu1 %v4410_v35 }
 0x1b6   :  { %4348 = vmatprep.subr.bf16.mxu1 %v4427_v38  ;;  %3672 = vmatmul.mubr.bf16.vlgmr.msra.gmra.mxu0 %v3112_v21 }
 0x1b7   :  { %4327 = vmatpush3.bf16.msra.mxu0 %v4412_v1 }
 0x1b8   :  { %3712 = vmatmul.mubr.bf16.vlgmr.msra.gmra.mxu1 %v3114_v40  ;;  %4328 = vmatprep.subr.bf16.mxu0 %v4413_v60 }
 0x1b9   :  { %4349 = vmatpush3.bf16.msra.mxu1 %v4428_v39 }
 0x1ba   :  { %4350 = vmatprep.subr.bf16.mxu1 %v4429_v41 }
 0x1bb   :  { %4329 = vmatpush3.bf16.msra.mxu0 %v4414_v42  ;;  %v446_v42 = vsub.s32 6, %v5322_v44 }
 0x1bc   :  { %4330 = vmatprep.subr.bf16.mxu0 %v4415_v45  ;;  %v450_v45 = vsub.s32 7, %v5322_v44 }
 0x1bd   :  { %4351 = vmatpush3.bf16.msra.mxu1 %v4430_v16 }
 0x1be   :  { %4352 = vmatprep.subr.bf16.mxu1 %v4431_v46  ;;  %v447_v46 = vrot.slane %v5856_v10, %v446_v42 }
 0x1bf   :  { %4331 = vmatpush3.bf16.msra.mxu0 %v4416_v20 }
 0x1c0   :  { %4332 = vmatprep.subr.bf16.mxu0 %v4417_v19  ;;  %v451_v19 = vrot.slane %v5856_v10, %v450_v45 }
 0x1c1   :  { %4353 = vmatpush3.bf16.msra.mxu1 %v4432_v48 }
 0x1c2   :  { %4354 = vmatprep.subr.bf16.mxu1 %v4433_v49 }
 0x1c3   :  { %4333 = vmatpush3.bf16.msra.mxu0 %v4418_v50 }
 0x1c4   :  { %4334 = vmatprep.subr.bf16.mxu0 %v4419_v31 }
 0x1c5   :  { %4355 = vmatpush3.bf16.msra.mxu1 %v4434_v61 }
 0x1c6   :  { %4356 = vmatprep.subr.bf16.mxu1 %v4435_v3 }
 0x1c7   :  { %4335 = vmatpush3.bf16.msra.mxu0 %v4420_v51 }
 0x1c8   :  { %4336 = vmatprep.subr.bf16.mxu0 %v4421_v25 }
 0x1c9   :  { %4357 = vmatpush3.bf16.msra.mxu1 %v4436_v5 }
 0x1ca   :  { %4358 = vmatprep.subr.bf16.mxu1 %v4437_v43  ;;  %v4217_v43 = vld [vmem:[%s6023_s4] ss:$0 sm:$0xff]  ;;  %s3806_s4 = sshll.u32 %s4469_s8, 4  ;;  %s3807_s4 = int_to_ptr.vmem [resolvable:$true] %s3806_s4 }
 0x1cb   :  { %4337 = vmatpush3.bf16.msra.mxu0 %v4422_v52  ;;  %s4446_s9 = scalar_lea.vmem %s3807_s4, 128  ;;  %p4451_p1 = scmp.lt.s32.totalorder %s3807_s4, %s3807_s4 }
 0x1cc   :  { %4338 = vmatprep.subr.bf16.mxu0 %v4423_v55  ;;  %p4447_p0 = scmp.ne.s32.totalorder %s3807_s4, %s4446_s9  ;;  %p4452_p2 = scmp.lt.s32.totalorder %s4446_s9, %s4446_s9 }
 0x1cd   :  { %4359 = vmatpush3.bf16.msra.mxu1 %v4438_v8 }
 0x1ce   :  { %v2810_v57 = vpop.f32.mrf.mxu0  ;;  %4360 = vmatprep.subr.bf16.mxu1 %v4439_v11  ;;  %p4453_p3 = por %p4452_p2, %p4451_p1 }
 0x1cf   :  { %4339 = vmatpush3.bf16.msra.mxu0 %v4424_v34  ;;  %v2811_v58 = vadd.f32 %v2810_v57, %v439_v22 }
 0x1d0   :  { %v2851_v62 = vpop.f32.mrf.mxu1  ;;  %v2812_v0 = vpop.f32.mrf.mxu0  ;;  %4340 = vmatprep.subr.bf16.mxu0 %v4425_v56  ;;  %p4454_p4 = pnand %p4453_p3, %p4447_p0 }
 0x1d1   :  { %4361 = vmatpush3.bf16.msra.mxu1 %v4440_v12  ;;  %v2813_v59 = vadd.f32 %v2812_v0, %v443_v24  ;;  %v2852_v53 = vadd.f32 %v2851_v62, %v2811_v58 }
 0x1d2   :  { %v2853_v2 = vpop.f32.mrf.mxu1  ;;  %v2814_v32 = vpop.f32.mrf.mxu0  ;;  %4362 = vmatprep.subr.bf16.mxu1 %v4441_v14 }
 0x1d3   :  { %4341 = vmatpush3.bf16.msra.mxu0 %v4426_v63  ;;  %v2854_v26 = vadd.f32 %v2853_v2, %v2813_v59 }
 0x1d4   :  { %v2855_v23 = vpop.f32.mrf.mxu1  ;;  %v2815_v6 = vpop.f32.mrf.mxu0 }
 0x1d5   :  { %4363 = vmatpush3.bf16.msra.mxu1 %v4442_v15 }
 0x1d6   :  { %v2856_v7 = vpop.f32.mrf.mxu1 }
 0x1d8   :  { %v2933_v9 = vpop.f32.mrf.mxu1 }
 0x1da   :  { %v2935_v4 = vpop.f32.mrf.mxu1 }
 0x1dc   :  { %v2937_v13 = vpop.f32.mrf.mxu1 }
 0x1de   :  { %v2938_v47 = vpop.f32.mrf.mxu1 }
 0x20e   :  { %v2892_v54 = vpop.f32.mrf.mxu0 }
 0x20f   :  { %v2893_v27 = vadd.f32 %v2892_v54, %v2852_v53 }
 0x210   :  { %v2894_v28 = vpop.f32.mrf.mxu0 }
 0x211   :  { %v2934_v29 = vadd.f32 %v2933_v9, %v2893_v27  ;;  %v2895_v30 = vadd.f32 %v2894_v28, %v2854_v26 }
 0x212   :  { %v2896_v33 = vpop.f32.mrf.mxu0 }
 0x213   :  { %v2936_v35 = vadd.f32 %v2935_v4, %v2895_v30  ;;  %v3108_v36 = vmax.f32 %v2934_v29, 0.0 }
 0x214   :  { %v2897_v37 = vpop.f32.mrf.mxu0 }
 0x215   :  { %v3109_v38 = vmax.f32 %v2936_v35, 0.0  ;;  %v3116_v60 = vpack.c.bf16 %v3108_v36, %v3108_v36 }
 0x217   :  { %v3117_v1 = vpack.c.bf16 %v3109_v38, %v3109_v38 }
 0x218   :  { %v2974_v21 = vpop.f32.mrf.mxu1 }
 0x219   :  { %3751 = vmatprep.mubr.bf16.mxu0 %v3117_v1  ;;  %v2975_v49 = vadd.f32 %v2974_v21, %v447_v46 }
 0x21a   :  { %v2976_v39 = vpop.f32.mrf.mxu1  ;;  %3752 = vmatmul.mubr.bf16.vlgmr.msra.gmra.mxu0 %v3116_v60 }
 0x21b   :  { %v2977_v31 = vadd.f32 %v2976_v39, %v451_v19 }
 0x21c   :  { %v2978_v40 = vpop.f32.mrf.mxu1 }
 0x21e   :  { %v2979_v41 = vpop.f32.mrf.mxu1 }
 0x24e   :  { %v3015_v16 = vpop.f32.mrf.mxu0 }
 0x24f   :  { %v3016_v51 = vadd.f32 %v3015_v16, %v2975_v49 }
 0x250   :  { %v3017_v20 = vpop.f32.mrf.mxu0 }
 0x251   :  { %v3018_v55 = vadd.f32 %v3017_v20, %v2977_v31 }
 0x252   :  { %v3019_v48 = vpop.f32.mrf.mxu0 }
 0x254   :  { %v3020_v50 = vpop.f32.mrf.mxu0 }
 0x256   :  { %v3097_v25 = vpop.f32.mrf.mxu0 }
 0x258   :  { %v3056_v52 = vpop.f32.mrf.mxu1  ;;  %v3099_v56 = vpop.f32.mrf.mxu0 }
 0x259   :  { %v3057_v34 = vadd.f32 %v3056_v52, %v3016_v51 }
 0x25a   :  { %v3058_v57 = vpop.f32.mrf.mxu1  ;;  %v3101_v44 = vpop.f32.mrf.mxu0 }
 0x25b   :  { %v3098_v61 = vadd.f32 %v3097_v25, %v3057_v34  ;;  %v3059_v62 = vadd.f32 %v3058_v57, %v3018_v55 }
 0x25c   :  { %v3060_v63 = vpop.f32.mrf.mxu1  ;;  %v3102_v2 = vpop.f32.mrf.mxu0 }
 0x25d   :  { %v3100_v0 = vadd.f32 %v3099_v56, %v3059_v62  ;;  %v3110_v3 = vmax.f32 %v3098_v61, 0.0 }
 0x25e   :  { %v3061_v32 = vpop.f32.mrf.mxu1 }
 0x25f   :  { %v3111_v10 = vmax.f32 %v3100_v0, 0.0  ;;  %v3118_v23 = vpack.c.bf16 %v3110_v3, %v3110_v3 }
 0x261   :  { %v3119_v5 = vpack.c.bf16 %v3111_v10, %v3111_v10 }
 0x263   :  { %3791 = vmatprep.mubr.bf16.mxu1 %v3119_v5 }
 0x264   :  { %3792 = vmatmul.mubr.bf16.vlgmr.msra.gmra.mxu1 %v3118_v23 }
 0x276   :  { %v4298_v6 = vpop.f32.mrf.mxu0 }
 0x278   :  { %v4320_v7 = vpop.f32.mrf.mxu1  ;;  %v4299_v8 = vpop.f32.mrf.mxu0 }
 0x279   :  { %v4300_v9 = vadd.f32 %v4299_v8, %v4298_v6 }
 0x27a   :  { %v4321_v4 = vpop.f32.mrf.mxu1  ;;  %v4301_v12 = vpop.f32.mrf.mxu0 }
 0x27b   :  { %v4322_v11 = vadd.f32 %v4321_v4, %v4320_v7  ;;  %v3674_v13 = vadd.f32 %v4300_v9, %v4217_v43 }
 0x27c   :  { %v4323_v47 = vpop.f32.mrf.mxu1  ;;  %v4302_v14 = vpop.f32.mrf.mxu0 }
 0x27d   :  { %v3714_v15 = vadd.f32 %v4322_v11, %v3674_v13 }
 0x27e   :  { %v4324_v17 = vpop.f32.mrf.mxu1 }
 0x2da   :  { %v4342_v18 = vpop.f32.mrf.mxu0 }
 0x2dc   :  { %v4343_v22 = vpop.f32.mrf.mxu0 }
 0x2dd   :  { %v4344_v24 = vadd.f32 %v4343_v22, %v4342_v18 }
 0x2de   :  { %v4345_v58 = vpop.f32.mrf.mxu0 }
 0x2df   :  { %v3754_v59 = vadd.f32 %v4344_v24, %v3714_v15 }
 0x2e0   :  { %v4346_v53 = vpop.f32.mrf.mxu0 }
 0x324   :  { %v4364_v54 = vpop.f32.mrf.mxu1 }
 0x326   :  { %v4365_v26 = vpop.f32.mrf.mxu1 }
 0x327   :  { %v4366_v27 = vadd.f32 %v4365_v26, %v4364_v54 }
 0x328   :  { %v4367_v28 = vpop.f32.mrf.mxu1 }
 0x329   :  { %v3794_v29 = vadd.f32 %v4366_v27, %v3754_v59 }
 0x32a   :  { %v4368_v30 = vpop.f32.mrf.mxu1 }
 0x32b   :  { %3799 = vst [vmem:[#allocation2] sm:$0xff] %v3794_v29 }
 0x32c   :  { %4457 = shalt.err (!%p4454_p4)
}
 0x32d   :  { %3809 = dma.vmem_to_hbm [thread:$0]  %s3807_s4, 128, %s6024_s5, [#allocation3]  }
 0x32e   :  { %4466 = dma.done.wait [#allocation3], 128  }
 0x32f   :  { %4467 = vsyncadd [#allocation3], 4294967168 }
 0x330   :  { %3813 = vsyncpa [#allocation3], 1 }

</bundles_post_ra>
